<compile_context>
chip_gen: v7x
topology: tpu7x:2x2x1
jax: 0.10.0
libtpu: 0.0.40
codegen_flags: <defaults>
</compile_context>

<pallas_src>
import math
import functools

import jax
import jax.numpy as jnp
import numpy as np
from jax import lax
from jax.experimental import pallas as pl
from jax.experimental.pallas import tpu as pltpu


def _segformer_attn_kernel(
    x_ref, patch_ref,
    wq_ref, bq_ref, wk_ref, bk_ref, wv_ref, bv_ref,
    wsr_ref, bsr_ref, gamma_ref, beta_ref,
    wo_ref, bo_ref,
    out_ref,
    k_scr, v_scr, ctx_scr,
    *, num_heads, head_dim, ln_eps,
):
    qi = pl.program_id(1)

    # ---- sequence reduction (Conv2d k=s=sr as matmul over patches) + LayerNorm + fused
    #      full-width K/V projections: once per batch element, stored lane-dense
    #      (Nr, C) bf16 in VMEM scratch and reused by every query tile. ----
    @pl.when(qi == 0)
    def _():
        xr = jnp.dot(patch_ref[...], wsr_ref[...],
                     preferred_element_type=jnp.float32) + bsr_ref[...]    # (Nr, C) f32
        mean = jnp.mean(xr, axis=-1, keepdims=True)
        var = jnp.mean(jnp.square(xr - mean), axis=-1, keepdims=True)
        xr = (xr - mean) * lax.rsqrt(var + ln_eps)
        xr = (xr * gamma_ref[...] + beta_ref[...]).astype(jnp.bfloat16)    # LN f32, cast for MXU
        k_scr[...] = (jnp.dot(xr, wk_ref[...], preferred_element_type=jnp.float32)
                      + bk_ref[...]).astype(jnp.bfloat16)                  # (Nr, C)
        v_scr[...] = (jnp.dot(xr, wv_ref[...], preferred_element_type=jnp.float32)
                      + bv_ref[...]).astype(jnp.bfloat16)                  # (Nr, C)

    # ---- fused, full C-wide query projection for this tile
    #      (1/sqrt(head_dim) is pre-folded into wq/bq on the host). ----
    x_t = x_ref[...]                                                       # (TQ, C) bf16
    q = (jnp.dot(x_t, wq_ref[...], preferred_element_type=jnp.float32)
         + bq_ref[...]).astype(jnp.bfloat16)                               # (TQ, C)

    # ---- per-head attention; per-head context written lane-dense into ctx_scr. ----
    for h in range(num_heads):               # static unroll (num_heads <= 8 for Segformer)
        lo = h * head_dim
        q_h = q[:, lo:lo + head_dim]                                       # (TQ, dh)
        k_h = k_scr[:, lo:lo + head_dim]                                   # (Nr, dh)
        # scores: contract head_dim against head_dim (no explicit transpose)
        s = lax.dot_general(q_h, k_h,
                            dimension_numbers=(((1,), (1,)), ((), ())),
                            preferred_element_type=jnp.float32)            # (TQ, Nr) f32
        s = s - jnp.max(s, axis=-1, keepdims=True)
        p = jnp.exp(s)
        denom = jnp.sum(p, axis=-1, keepdims=True)                         # (TQ, 1)
        # attention-probs dropout: identity in eval mode
        ctx = jnp.dot(p.astype(jnp.bfloat16), v_scr[:, lo:lo + head_dim],
                      preferred_element_type=jnp.float32)                  # (TQ, dh)
        # normalize AFTER the PV matmul: a (TQ,1) exact reciprocal instead of a
        # (TQ, Nr) VPU scale of the prob matrix.
        ctx = ctx * pl.reciprocal(denom, approx=False)
        ctx_scr[:, lo:lo + head_dim] = ctx.astype(jnp.bfloat16)

    # ---- SegformerSelfOutput dense: one full C-wide output projection + bias
    #      (hidden dropout = identity in eval mode). ----
    out = jnp.dot(ctx_scr[...], wo_ref[...],
                  preferred_element_type=jnp.float32) + bo_ref[...]
    out_ref[...] = out.astype(out_ref.dtype)


def _pick_query_tile(N, target=512):
    if N <= target:
        return N
    for t in (target, 256, 128, 64, 32, 16, 8):
        if N % t == 0:
            return t
    return N


def segformer_attention(hidden_states, params, height, width, sr_ratio, num_heads,
                        tile_q=None, ln_eps=1e-5):
    B, N, C = hidden_states.shape
    assert N == height * width
    assert C % num_heads == 0
    head_dim = C // num_heads
    assert sr_ratio > 1  # TODO(synk): sr_ratio == 1 path not implemented.
    assert height % sr_ratio == 0 and width % sr_ratio == 0
    Hr, Wr = height // sr_ratio, width // sr_ratio
    Nr = Hr * Wr
    Kp = C * sr_ratio * sr_ratio
    if tile_q is None:
        tile_q = _pick_query_tile(N)
    assert N % tile_q == 0

    # ---- host-side parameter prep: bf16 MXU operands, f32 biases/LN params,
    #      1/sqrt(head_dim) folded into the query projection. ----
    scale = 1.0 / math.sqrt(head_dim)
    wq = (params["wq"] * scale).astype(jnp.bfloat16)
    bq = (params["bq"] * scale).astype(jnp.float32)
    wk = params["wk"].astype(jnp.bfloat16)
    bk = params["bk"].astype(jnp.float32)
    wv = params["wv"].astype(jnp.bfloat16)
    bv = params["bv"].astype(jnp.float32)
    wo = params["wo"].astype(jnp.bfloat16)
    bo = params["bo"].astype(jnp.float32)
    wsr = params["wsr"].astype(jnp.bfloat16)
    bsr = params["bsr"].astype(jnp.float32)
    gamma = params["gamma"].astype(jnp.float32)
    beta = params["beta"].astype(jnp.float32)

    # hidden_states DMA'd into the kernel as bf16 (halves HBM read bytes; the kernel
    # would cast to bf16 before every MXU use anyway).
    x_bf = hidden_states.astype(jnp.bfloat16)

    # im2col for the sequence-reduction conv, flattened (c_in, kh, kw) order, bf16.
    # TODO(synk): fuse this strided gather into the kernel to remove the extra HBM pass.
    x4 = x_bf.reshape(B, height, width, C)
    patches = (
        x4.reshape(B, Hr, sr_ratio, Wr, sr_ratio, C)
        .transpose(0, 1, 3, 5, 2, 4)                 # (B, Hr, Wr, C, sr, sr)
        .reshape(B, Nr, Kp)
    )

    kernel = functools.partial(
        _segformer_attn_kernel,
        num_heads=num_heads, head_dim=head_dim, ln_eps=ln_eps,
    )

    out_dtype = hidden_states.dtype
    weights = (wq, bq, wk, bk, wv, bv, wsr, bsr, gamma, beta, wo, bo)

    # Explicit VMEM budget (review: derive from the actual buffer sum, with headroom).
    weight_bytes = sum(int(a.size) * a.dtype.itemsize for a in weights)
    buf_bytes = (
        2 * tile_q * C * 2                                   # x tile (bf16), double-buffered
        + 2 * Nr * Kp * 2                                    # patches (bf16), <= 2 buffers
        + 2 * weight_bytes                                   # weights, <= 2 buffers
        + 2 * tile_q * C * jnp.dtype(out_dtype).itemsize     # output tile
        + 2 * Nr * C * 2                                     # K/V scratch (bf16)
        + tile_q * C * 2                                     # ctx scratch (bf16)
    )
    vmem_limit = int(min(64 * 1024 * 1024, 2 * buf_bytes + 16 * 1024 * 1024))

    def call(single_buffer_consts):
        def const_spec(shape):
            nd = len(shape)
            idx = lambda *_, _nd=nd: (0,) * _nd
            if single_buffer_consts:
                return pl.BlockSpec(shape, idx, pipeline_mode=pl.Buffered(1))
            return pl.BlockSpec(shape, idx)

        if single_buffer_consts:
            patch_spec = pl.BlockSpec((None, Nr, Kp), lambda b, qi: (b, 0, 0),
                                      pipeline_mode=pl.Buffered(1))
        else:
            patch_spec = pl.BlockSpec((None, Nr, Kp), lambda b, qi: (b, 0, 0))

        return pl.pallas_call(
            kernel,
            out_shape=jax.ShapeDtypeStruct((B, N, C), out_dtype),
            grid_spec=pltpu.PrefetchScalarGridSpec(
                num_scalar_prefetch=0,
                grid=(B, N // tile_q),
                in_specs=[
                    # hidden_states: tiled over the query axis (pipelined prefetch).
                    pl.BlockSpec((None, tile_q, C), lambda b, qi: (b, qi, 0)),
                    # conv patches: per batch element, only read at qi == 0.
                    patch_spec,
                    const_spec(wq.shape), const_spec(bq.shape),
                    const_spec(wk.shape), const_spec(bk.shape),
                    const_spec(wv.shape), const_spec(bv.shape),
                    const_spec(wsr.shape), const_spec(bsr.shape),
                    const_spec(gamma.shape), const_spec(beta.shape),
                    const_spec(wo.shape), const_spec(bo.shape),
                ],
                out_specs=pl.BlockSpec((None, tile_q, C), lambda b, qi: (b, qi, 0)),
                scratch_shapes=[
                    pltpu.VMEM((Nr, C), jnp.bfloat16),       # K, lane-dense
                    pltpu.VMEM((Nr, C), jnp.bfloat16),       # V, lane-dense
                    pltpu.VMEM((tile_q, C), jnp.bfloat16),   # per-tile context (pre-Wo)
                ],
            ),
            compiler_params=pltpu.CompilerParams(
                # query-tile axis must be "arbitrary": the K/V scratch is computed at
                # qi == 0 and carried across the remaining tiles of the same batch element.
                dimension_semantics=("parallel", "arbitrary"),
                vmem_limit_bytes=vmem_limit,
            ),
        )(x_bf, patches, *weights)

    try:
        return jax.block_until_ready(call(True))
    except Exception:
        # TODO(synk): this jax build rejected pl.Buffered(1) single-buffering of the
        # constant-index blocks; fall back to default double-buffering.
        return call(False)


def reference_forward(hidden_states, params, height, width, sr_ratio, num_heads):
    """Plain-JAX fp32 reference with identical math (for correctness check)."""
    B, N, C = hidden_states.shape
    head_dim = C // num_heads
    Hr, Wr = height // sr_ratio, width // sr_ratio
    Nr = Hr * Wr
    Kp = C * sr_ratio * sr_ratio

    q = hidden_states @ params["wq"] + params["bq"]
    q = q / math.sqrt(head_dim)

    x4 = hidden_states.reshape(B, height, width, C)
    patches = (
        x4.reshape(B, Hr, sr_ratio, Wr, sr_ratio, C)
        .transpose(0, 1, 3, 5, 2, 4)
        .reshape(B, Nr, Kp)
    )
    xr = patches @ params["wsr"] + params["bsr"]
    mean = jnp.mean(xr, -1, keepdims=True)
    var = jnp.mean((xr - mean) ** 2, -1, keepdims=True)
    xr = (xr - mean) / jnp.sqrt(var + 1e-5) * params["gamma"] + params["beta"]

    k = xr @ params["wk"] + params["bk"]
    v = xr @ params["wv"] + params["bv"]

    def split(t, L):
        return t.reshape(B, L, num_heads, head_dim).transpose(0, 2, 1, 3)

    qh, kh, vh = split(q, N), split(k, Nr), split(v, Nr)
    scores = jnp.einsum("bhqd,bhkd->bhqk", qh, kh)
    probs = jax.nn.softmax(scores, axis=-1)
    ctx = jnp.einsum("bhqk,bhkd->bhqd", probs, vh)
    ctx = ctx.transpose(0, 2, 1, 3).reshape(B, N, C)
    return ctx @ params["wo"] + params["bo"]


def make_params(key, C, sr_ratio):
    Kp = C * sr_ratio * sr_ratio
    keys = jax.random.split(key, 10)
    s = 0.05
    return {
        "wq": jax.random.normal(keys[0], (C, C), jnp.float32) * s,
        "bq": jax.random.normal(keys[1], (1, C), jnp.float32) * s,
        "wk": jax.random.normal(keys[2], (C, C), jnp.float32) * s,
        "bk": jax.random.normal(keys[3], (1, C), jnp.float32) * s,
        "wv": jax.random.normal(keys[4], (C, C), jnp.float32) * s,
        "bv": jax.random.normal(keys[5], (1, C), jnp.float32) * s,
        "wsr": jax.random.normal(keys[6], (Kp, C), jnp.float32) * s,
        "bsr": jax.random.normal(keys[7], (1, C), jnp.float32) * s,
        "gamma": jnp.ones((1, C), jnp.float32),
        "beta": jnp.zeros((1, C), jnp.float32),
        "wo": jax.random.normal(keys[8], (C, C), jnp.float32) * s,
        "bo": jax.random.normal(keys[9], (1, C), jnp.float32) * s,
    }


if __name__ == "__main__":
    B = 2
    C = 32            # hidden_size
    num_heads = 2
    sr_ratio = 2
    H = W = 8
    N = H * W

    key = jax.random.PRNGKey(0)
    kx, kp = jax.random.split(key)
    hidden_states = jax.random.normal(kx, (B, N, C), jnp.float32)
    params = make_params(kp, C, sr_ratio)

    # tile_q=32 so the small test also exercises multiple query tiles per batch element
    # (K/V computed at the first tile and reused by the second).
    out = segformer_attention(hidden_states, params, H, W, sr_ratio, num_heads, tile_q=32)
    out = jax.block_until_ready(out)

    ref = reference_forward(hidden_states, params, H, W, sr_ratio, num_heads)
    # bf16 MXU operands (input, projections, probs) vs fp32 reference -> loose tolerance.
    np.testing.assert_allclose(np.asarray(out), np.asarray(ref), atol=2e-2, rtol=2e-2)

    print("KERNEL_OK")
</pallas_src>

<mosaic_0001>
module attributes {stable_mosaic.version = 11 : i64} {
  func.func @_segformer_attn_kernel(%arg0: i32, %arg1: i32, %arg2: memref<1x32x32xbf16, #tpu.memory_space<vmem>>, %arg3: memref<1x16x128xbf16, #tpu.memory_space<vmem>>, %arg4: memref<32x32xbf16, #tpu.memory_space<vmem>>, %arg5: memref<1x32xf32, #tpu.memory_space<vmem>>, %arg6: memref<32x32xbf16, #tpu.memory_space<vmem>>, %arg7: memref<1x32xf32, #tpu.memory_space<vmem>>, %arg8: memref<32x32xbf16, #tpu.memory_space<vmem>>, %arg9: memref<1x32xf32, #tpu.memory_space<vmem>>, %arg10: memref<128x32xbf16, #tpu.memory_space<vmem>>, %arg11: memref<1x32xf32, #tpu.memory_space<vmem>>, %arg12: memref<1x32xf32, #tpu.memory_space<vmem>>, %arg13: memref<1x32xf32, #tpu.memory_space<vmem>>, %arg14: memref<32x32xbf16, #tpu.memory_space<vmem>>, %arg15: memref<1x32xf32, #tpu.memory_space<vmem>>, %arg16: memref<1x32x32xf32, #tpu.memory_space<vmem>>, %arg17: memref<16x32xbf16, #tpu.memory_space<vmem>>, %arg18: memref<16x32xbf16, #tpu.memory_space<vmem>>, %arg19: memref<32x32xbf16, #tpu.memory_space<vmem>>) attributes {dimension_semantics = [#tpu.dimension_semantics<parallel>, #tpu.dimension_semantics<arbitrary>], iteration_bounds = array<i64: 2, 2>, scalar_prefetch = 0 : i64, scratch_operands = 3 : i64, tpu.core_type = #tpu.core_type<tc>, window_params = [{transform_indices = @transform_0, window_bounds = array<i64: 1, 32, 32>}, {pipeline_mode = #tpu.pipeline_mode<synchronous>, transform_indices = @transform_1, window_bounds = array<i64: 1, 16, 128>}, {pipeline_mode = #tpu.pipeline_mode<synchronous>, transform_indices = @transform_2, window_bounds = array<i64: 32, 32>}, {pipeline_mode = #tpu.pipeline_mode<synchronous>, transform_indices = @transform_3, window_bounds = array<i64: 1, 32>}, {pipeline_mode = #tpu.pipeline_mode<synchronous>, transform_indices = @transform_4, window_bounds = array<i64: 32, 32>}, {pipeline_mode = #tpu.pipeline_mode<synchronous>, transform_indices = @transform_5, window_bounds = array<i64: 1, 32>}, {pipeline_mode = #tpu.pipeline_mode<synchronous>, transform_indices = @transform_6, window_bounds = array<i64: 32, 32>}, {pipeline_mode = #tpu.pipeline_mode<synchronous>, transform_indices = @transform_7, window_bounds = array<i64: 1, 32>}, {pipeline_mode = #tpu.pipeline_mode<synchronous>, transform_indices = @transform_8, window_bounds = array<i64: 128, 32>}, {pipeline_mode = #tpu.pipeline_mode<synchronous>, transform_indices = @transform_9, window_bounds = array<i64: 1, 32>}, {pipeline_mode = #tpu.pipeline_mode<synchronous>, transform_indices = @transform_10, window_bounds = array<i64: 1, 32>}, {pipeline_mode = #tpu.pipeline_mode<synchronous>, transform_indices = @transform_11, window_bounds = array<i64: 1, 32>}, {pipeline_mode = #tpu.pipeline_mode<synchronous>, transform_indices = @transform_12, window_bounds = array<i64: 32, 32>}, {pipeline_mode = #tpu.pipeline_mode<synchronous>, transform_indices = @transform_13, window_bounds = array<i64: 1, 32>}, {transform_indices = @transform_14, window_bounds = array<i64: 1, 32, 32>}]} {
    %c0_i32 = arith.constant 0 : i32
    %0 = arith.cmpi eq, %arg1, %c0_i32 : i32
    %1 = arith.extui %0 : i1 to i32
    %c0_i32_0 = arith.constant 0 : i32
    %2 = arith.cmpi ne, %1, %c0_i32_0 : i32
    scf.if %2 {
      %c0_36 = arith.constant 0 : index
      %c0_37 = arith.constant 0 : index
      %c0_38 = arith.constant 0 : index
      %56 = vector.load %arg3[%c0_36, %c0_37, %c0_38] : memref<1x16x128xbf16, #tpu.memory_space<vmem>>, vector<1x16x128xbf16>
      %57 = vector.shape_cast %56 : vector<1x16x128xbf16> to vector<16x128xbf16>
      %c0_39 = arith.constant 0 : index
      %c0_40 = arith.constant 0 : index
      %58 = vector.load %arg10[%c0_39, %c0_40] : memref<128x32xbf16, #tpu.memory_space<vmem>>, vector<128x32xbf16>
      %cst_41 = arith.constant dense<0.000000e+00> : vector<16x32xf32>
      %59 = tpu.matmul %57, %58, %cst_41 {dimension_numbers = #tpu.dot_dimension_numbers<[1], [0], [0], [1], [0, 0, 1, 1], [], []>} : vector<16x128xbf16>, vector<128x32xbf16>, vector<16x32xf32> -> vector<16x32xf32>
      %c0_42 = arith.constant 0 : index
      %c0_43 = arith.constant 0 : index
      %60 = vector.load %arg11[%c0_42, %c0_43] : memref<1x32xf32, #tpu.memory_space<vmem>>, vector<1x32xf32>
      %61 = vector.broadcast %60 : vector<1x32xf32> to vector<16x32xf32>
      %62 = arith.addf %59, %61 : vector<16x32xf32>
      %cst_44 = arith.constant dense<0.000000e+00> : vector<16xf32>
      %63 = vector.multi_reduction <add>, %62, %cst_44 [1] : vector<16x32xf32> to vector<16xf32>
      %64 = vector.shape_cast %63 : vector<16xf32> to vector<16x1xf32>
      %cst_45 = arith.constant 3.200000e+01 : f32
      %65 = vector.broadcast %cst_45 : f32 to vector<16x1xf32>
      %66 = arith.divf %64, %65 : vector<16x1xf32>
      %67 = vector.broadcast %66 : vector<16x1xf32> to vector<16x32xf32>
      %68 = arith.subf %62, %67 : vector<16x32xf32>
      %69 = arith.mulf %68, %68 : vector<16x32xf32>
      %cst_46 = arith.constant dense<0.000000e+00> : vector<16xf32>
      %70 = vector.multi_reduction <add>, %69, %cst_46 [1] : vector<16x32xf32> to vector<16xf32>
      %71 = vector.shape_cast %70 : vector<16xf32> to vector<16x1xf32>
      %cst_47 = arith.constant 3.200000e+01 : f32
      %72 = vector.broadcast %cst_47 : f32 to vector<16x1xf32>
      %73 = arith.divf %71, %72 : vector<16x1xf32>
      %74 = vector.broadcast %66 : vector<16x1xf32> to vector<16x32xf32>
      %75 = arith.subf %62, %74 : vector<16x32xf32>
      %cst_48 = arith.constant 9.99999974E-6 : f32
      %76 = vector.broadcast %cst_48 : f32 to vector<16x1xf32>
      %77 = arith.addf %73, %76 : vector<16x1xf32>
      %78 = math.rsqrt %77 : vector<16x1xf32>
      %79 = vector.broadcast %78 : vector<16x1xf32> to vector<16x32xf32>
      %80 = arith.mulf %75, %79 : vector<16x32xf32>
      %c0_49 = arith.constant 0 : index
      %c0_50 = arith.constant 0 : index
      %81 = vector.load %arg12[%c0_49, %c0_50] : memref<1x32xf32, #tpu.memory_space<vmem>>, vector<1x32xf32>
      %82 = vector.broadcast %81 : vector<1x32xf32> to vector<16x32xf32>
      %83 = arith.mulf %80, %82 : vector<16x32xf32>
      %c0_51 = arith.constant 0 : index
      %c0_52 = arith.constant 0 : index
      %84 = vector.load %arg13[%c0_51, %c0_52] : memref<1x32xf32, #tpu.memory_space<vmem>>, vector<1x32xf32>
      %85 = vector.broadcast %84 : vector<1x32xf32> to vector<16x32xf32>
      %86 = arith.addf %83, %85 : vector<16x32xf32>
      %87 = arith.truncf %86 : vector<16x32xf32> to vector<16x32xbf16>
      %c0_53 = arith.constant 0 : index
      %c0_54 = arith.constant 0 : index
      %88 = vector.load %arg6[%c0_53, %c0_54] : memref<32x32xbf16, #tpu.memory_space<vmem>>, vector<32x32xbf16>
      %cst_55 = arith.constant dense<0.000000e+00> : vector<16x32xf32>
      %89 = tpu.matmul %87, %88, %cst_55 {dimension_numbers = #tpu.dot_dimension_numbers<[1], [0], [0], [1], [0, 0, 1, 1], [], []>} : vector<16x32xbf16>, vector<32x32xbf16>, vector<16x32xf32> -> vector<16x32xf32>
      %c0_56 = arith.constant 0 : index
      %c0_57 = arith.constant 0 : index
      %90 = vector.load %arg7[%c0_56, %c0_57] : memref<1x32xf32, #tpu.memory_space<vmem>>, vector<1x32xf32>
      %91 = vector.broadcast %90 : vector<1x32xf32> to vector<16x32xf32>
      %92 = arith.addf %89, %91 : vector<16x32xf32>
      %93 = arith.truncf %92 : vector<16x32xf32> to vector<16x32xbf16>
      %c0_58 = arith.constant 0 : index
      %c0_59 = arith.constant 0 : index
      %94 = vector.load %arg17[%c0_58, %c0_59] : memref<16x32xbf16, #tpu.memory_space<vmem>>, vector<16x32xbf16>
      tpu.vector_store %arg17[%c0_58, %c0_59], %93 {strides = array<i32>} : memref<16x32xbf16, #tpu.memory_space<vmem>>, vector<16x32xbf16>,
      %c0_60 = arith.constant 0 : index
      %c0_61 = arith.constant 0 : index
      %95 = vector.load %arg8[%c0_60, %c0_61] : memref<32x32xbf16, #tpu.memory_space<vmem>>, vector<32x32xbf16>
      %cst_62 = arith.constant dense<0.000000e+00> : vector<16x32xf32>
      %96 = tpu.matmul %87, %95, %cst_62 {dimension_numbers = #tpu.dot_dimension_numbers<[1], [0], [0], [1], [0, 0, 1, 1], [], []>} : vector<16x32xbf16>, vector<32x32xbf16>, vector<16x32xf32> -> vector<16x32xf32>
      %c0_63 = arith.constant 0 : index
      %c0_64 = arith.constant 0 : index
      %97 = vector.load %arg9[%c0_63, %c0_64] : memref<1x32xf32, #tpu.memory_space<vmem>>, vector<1x32xf32>
      %98 = vector.broadcast %97 : vector<1x32xf32> to vector<16x32xf32>
      %99 = arith.addf %96, %98 : vector<16x32xf32>
      %100 = arith.truncf %99 : vector<16x32xf32> to vector<16x32xbf16>
      %c0_65 = arith.constant 0 : index
      %c0_66 = arith.constant 0 : index
      %101 = vector.load %arg18[%c0_65, %c0_66] : memref<16x32xbf16, #tpu.memory_space<vmem>>, vector<16x32xbf16>
      tpu.vector_store %arg18[%c0_65, %c0_66], %100 {strides = array<i32>} : memref<16x32xbf16, #tpu.memory_space<vmem>>, vector<16x32xbf16>,
    } else {
    }
    %c0 = arith.constant 0 : index
    %c0_1 = arith.constant 0 : index
    %c0_2 = arith.constant 0 : index
    %3 = vector.load %arg2[%c0, %c0_1, %c0_2] : memref<1x32x32xbf16, #tpu.memory_space<vmem>>, vector<1x32x32xbf16>
    %4 = vector.shape_cast %3 : vector<1x32x32xbf16> to vector<32x32xbf16>
    %c0_3 = arith.constant 0 : index
    %c0_4 = arith.constant 0 : index
    %5 = vector.load %arg4[%c0_3, %c0_4] : memref<32x32xbf16, #tpu.memory_space<vmem>>, vector<32x32xbf16>
    %cst = arith.constant dense<0.000000e+00> : vector<32x32xf32>
    %6 = tpu.matmul %4, %5, %cst {dimension_numbers = #tpu.dot_dimension_numbers<[1], [0], [0], [1], [0, 0, 1, 1], [], []>} : vector<32x32xbf16>, vector<32x32xbf16>, vector<32x32xf32> -> vector<32x32xf32>
    %c0_5 = arith.constant 0 : index
    %c0_6 = arith.constant 0 : index
    %7 = vector.load %arg5[%c0_5, %c0_6] : memref<1x32xf32, #tpu.memory_space<vmem>>, vector<1x32xf32>
    %8 = vector.broadcast %7 : vector<1x32xf32> to vector<32x32xf32>
    %9 = arith.addf %6, %8 : vector<32x32xf32>
    %10 = arith.truncf %9 : vector<32x32xf32> to vector<32x32xbf16>
    %11 = vector.extract_strided_slice %10 {offsets = [0, 0], sizes = [32, 16], strides = [1, 1]} : vector<32x32xbf16> to vector<32x16xbf16>
    %c0_7 = arith.constant 0 : index
    %c0_8 = arith.constant 0 : index
    %12 = vector.load %arg17[%c0_7, %c0_8] : memref<16x32xbf16, #tpu.memory_space<vmem>>, vector<16x16xbf16>
    %cst_9 = arith.constant dense<0.000000e+00> : vector<32x16xf32>
    %13 = tpu.matmul %11, %12, %cst_9 {dimension_numbers = #tpu.dot_dimension_numbers<[1], [1], [0], [0], [0, 0, 1, 0], [], []>} : vector<32x16xbf16>, vector<16x16xbf16>, vector<32x16xf32> -> vector<32x16xf32>
    %cst_10 = arith.constant dense<0xFF800000> : vector<32xf32>
    %14 = vector.multi_reduction <maximumf>, %13, %cst_10 [1] : vector<32x16xf32> to vector<32xf32>
    %15 = vector.shape_cast %14 : vector<32xf32> to vector<32x1xf32>
    %16 = vector.broadcast %15 : vector<32x1xf32> to vector<32x16xf32>
    %17 = arith.subf %13, %16 : vector<32x16xf32>
    %18 = math.exp %17 : vector<32x16xf32>
    %cst_11 = arith.constant dense<0.000000e+00> : vector<32xf32>
    %19 = vector.multi_reduction <add>, %18, %cst_11 [1] : vector<32x16xf32> to vector<32xf32>
    %20 = vector.shape_cast %19 : vector<32xf32> to vector<32x1xf32>
    %21 = arith.truncf %18 : vector<32x16xf32> to vector<32x16xbf16>
    %c0_12 = arith.constant 0 : index
    %c0_13 = arith.constant 0 : index
    %22 = vector.load %arg18[%c0_12, %c0_13] : memref<16x32xbf16, #tpu.memory_space<vmem>>, vector<16x16xbf16>
    %cst_14 = arith.constant dense<0.000000e+00> : vector<32x16xf32>
    %23 = tpu.matmul %21, %22, %cst_14 {dimension_numbers = #tpu.dot_dimension_numbers<[1], [0], [0], [1], [0, 0, 1, 1], [], []>} : vector<32x16xbf16>, vector<16x16xbf16>, vector<32x16xf32> -> vector<32x16xf32>
    %24 = tpu.reciprocal %20 : vector<32x1xf32> -> vector<32x1xf32>
    %25 = vector.broadcast %24 : vector<32x1xf32> to vector<32x16xf32>
    %26 = arith.mulf %23, %25 : vector<32x16xf32>
    %27 = arith.truncf %26 : vector<32x16xf32> to vector<32x16xbf16>
    %c0_15 = arith.constant 0 : index
    %c0_16 = arith.constant 0 : index
    %28 = vector.load %arg19[%c0_15, %c0_16] : memref<32x32xbf16, #tpu.memory_space<vmem>>, vector<32x16xbf16>
    tpu.vector_store %arg19[%c0_15, %c0_16], %27 {strides = array<i32>} : memref<32x32xbf16, #tpu.memory_space<vmem>>, vector<32x16xbf16>,
    %29 = vector.extract_strided_slice %10 {offsets = [0, 16], sizes = [32, 16], strides = [1, 1]} : vector<32x32xbf16> to vector<32x16xbf16>
    %c0_17 = arith.constant 0 : index
    %c16 = arith.constant 16 : index
    %30 = vector.load %arg17[%c0_17, %c16] : memref<16x32xbf16, #tpu.memory_space<vmem>>, vector<16x16xbf16>
    %cst_18 = arith.constant dense<0.000000e+00> : vector<32x16xf32>
    %31 = tpu.matmul %29, %30, %cst_18 {dimension_numbers = #tpu.dot_dimension_numbers<[1], [1], [0], [0], [0, 0, 1, 0], [], []>} : vector<32x16xbf16>, vector<16x16xbf16>, vector<32x16xf32> -> vector<32x16xf32>
    %cst_19 = arith.constant dense<0xFF800000> : vector<32xf32>
    %32 = vector.multi_reduction <maximumf>, %31, %cst_19 [1] : vector<32x16xf32> to vector<32xf32>
    %33 = vector.shape_cast %32 : vector<32xf32> to vector<32x1xf32>
    %34 = vector.broadcast %33 : vector<32x1xf32> to vector<32x16xf32>
    %35 = arith.subf %31, %34 : vector<32x16xf32>
    %36 = math.exp %35 : vector<32x16xf32>
    %cst_20 = arith.constant dense<0.000000e+00> : vector<32xf32>
    %37 = vector.multi_reduction <add>, %36, %cst_20 [1] : vector<32x16xf32> to vector<32xf32>
    %38 = vector.shape_cast %37 : vector<32xf32> to vector<32x1xf32>
    %39 = arith.truncf %36 : vector<32x16xf32> to vector<32x16xbf16>
    %c0_21 = arith.constant 0 : index
    %c16_22 = arith.constant 16 : index
    %40 = vector.load %arg18[%c0_21, %c16_22] : memref<16x32xbf16, #tpu.memory_space<vmem>>, vector<16x16xbf16>
    %cst_23 = arith.constant dense<0.000000e+00> : vector<32x16xf32>
    %41 = tpu.matmul %39, %40, %cst_23 {dimension_numbers = #tpu.dot_dimension_numbers<[1], [0], [0], [1], [0, 0, 1, 1], [], []>} : vector<32x16xbf16>, vector<16x16xbf16>, vector<32x16xf32> -> vector<32x16xf32>
    %42 = tpu.reciprocal %38 : vector<32x1xf32> -> vector<32x1xf32>
    %43 = vector.broadcast %42 : vector<32x1xf32> to vector<32x16xf32>
    %44 = arith.mulf %41, %43 : vector<32x16xf32>
    %45 = arith.truncf %44 : vector<32x16xf32> to vector<32x16xbf16>
    %c0_24 = arith.constant 0 : index
    %c16_25 = arith.constant 16 : index
    %46 = vector.load %arg19[%c0_24, %c16_25] : memref<32x32xbf16, #tpu.memory_space<vmem>>, vector<32x16xbf16>
    tpu.vector_store %arg19[%c0_24, %c16_25], %45 {strides = array<i32>} : memref<32x32xbf16, #tpu.memory_space<vmem>>, vector<32x16xbf16>,
    %c0_26 = arith.constant 0 : index
    %c0_27 = arith.constant 0 : index
    %47 = vector.load %arg19[%c0_26, %c0_27] : memref<32x32xbf16, #tpu.memory_space<vmem>>, vector<32x32xbf16>
    %c0_28 = arith.constant 0 : index
    %c0_29 = arith.constant 0 : index
    %48 = vector.load %arg14[%c0_28, %c0_29] : memref<32x32xbf16, #tpu.memory_space<vmem>>, vector<32x32xbf16>
    %cst_30 = arith.constant dense<0.000000e+00> : vector<32x32xf32>
    %49 = tpu.matmul %47, %48, %cst_30 {dimension_numbers = #tpu.dot_dimension_numbers<[1], [0], [0], [1], [0, 0, 1, 1], [], []>} : vector<32x32xbf16>, vector<32x32xbf16>, vector<32x32xf32> -> vector<32x32xf32>
    %c0_31 = arith.constant 0 : index
    %c0_32 = arith.constant 0 : index
    %50 = vector.load %arg15[%c0_31, %c0_32] : memref<1x32xf32, #tpu.memory_space<vmem>>, vector<1x32xf32>
    %51 = vector.broadcast %50 : vector<1x32xf32> to vector<32x32xf32>
    %52 = arith.addf %49, %51 : vector<32x32xf32>
    %c0_33 = arith.constant 0 : index
    %c0_34 = arith.constant 0 : index
    %c0_35 = arith.constant 0 : index
    %53 = vector.load %arg16[%c0_33, %c0_34, %c0_35] : memref<1x32x32xf32, #tpu.memory_space<vmem>>, vector<1x32x32xf32>
    %54 = vector.shape_cast %53 : vector<1x32x32xf32> to vector<32x32xf32>
    %55 = vector.shape_cast %52 : vector<32x32xf32> to vector<1x32x32xf32>
    tpu.vector_store %arg16[%c0_33, %c0_34, %c0_35], %55 {strides = array<i32>} : memref<1x32x32xf32, #tpu.memory_space<vmem>>, vector<1x32x32xf32>,
    return
  }
  func.func @transform_0(%arg0: i32, %arg1: i32) -> (i32, i32, i32) {
    %c0_i32 = arith.constant 0 : i32
    %c0_i32_0 = arith.constant 0 : i32
    return %arg0, %arg1, %c0_i32 : i32, i32, i32
  }
  func.func @transform_1(%arg0: i32, %arg1: i32) -> (i32, i32, i32) {
    %c0_i32 = arith.constant 0 : i32
    %c0_i32_0 = arith.constant 0 : i32
    %c0_i32_1 = arith.constant 0 : i32
    return %arg0, %c0_i32, %c0_i32_0 : i32, i32, i32
  }
  func.func @transform_2(%arg0: i32, %arg1: i32) -> (i32, i32) {
    %c0_i32 = arith.constant 0 : i32
    %c0_i32_0 = arith.constant 0 : i32
    %c0_i32_1 = arith.constant 0 : i32
    return %c0_i32, %c0_i32_0 : i32, i32
  }
  func.func @transform_3(%arg0: i32, %arg1: i32) -> (i32, i32) {
    %c0_i32 = arith.constant 0 : i32
    %c0_i32_0 = arith.constant 0 : i32
    %c0_i32_1 = arith.constant 0 : i32
    return %c0_i32, %c0_i32_0 : i32, i32
  }
  func.func @transform_4(%arg0: i32, %arg1: i32) -> (i32, i32) {
    %c0_i32 = arith.constant 0 : i32
    %c0_i32_0 = arith.constant 0 : i32
    %c0_i32_1 = arith.constant 0 : i32
    return %c0_i32, %c0_i32_0 : i32, i32
  }
  func.func @transform_5(%arg0: i32, %arg1: i32) -> (i32, i32) {
    %c0_i32 = arith.constant 0 : i32
    %c0_i32_0 = arith.constant 0 : i32
    %c0_i32_1 = arith.constant 0 : i32
    return %c0_i32, %c0_i32_0 : i32, i32
  }
  func.func @transform_6(%arg0: i32, %arg1: i32) -> (i32, i32) {
    %c0_i32 = arith.constant 0 : i32
    %c0_i32_0 = arith.constant 0 : i32
    %c0_i32_1 = arith.constant 0 : i32
    return %c0_i32, %c0_i32_0 : i32, i32
  }
  func.func @transform_7(%arg0: i32, %arg1: i32) -> (i32, i32) {
    %c0_i32 = arith.constant 0 : i32
    %c0_i32_0 = arith.constant 0 : i32
    %c0_i32_1 = arith.constant 0 : i32
    return %c0_i32, %c0_i32_0 : i32, i32
  }
  func.func @transform_8(%arg0: i32, %arg1: i32) -> (i32, i32) {
    %c0_i32 = arith.constant 0 : i32
    %c0_i32_0 = arith.constant 0 : i32
    %c0_i32_1 = arith.constant 0 : i32
    return %c0_i32, %c0_i32_0 : i32, i32
  }
  func.func @transform_9(%arg0: i32, %arg1: i32) -> (i32, i32) {
    %c0_i32 = arith.constant 0 : i32
    %c0_i32_0 = arith.constant 0 : i32
    %c0_i32_1 = arith.constant 0 : i32
    return %c0_i32, %c0_i32_0 : i32, i32
  }
  func.func @transform_10(%arg0: i32, %arg1: i32) -> (i32, i32) {
    %c0_i32 = arith.constant 0 : i32
    %c0_i32_0 = arith.constant 0 : i32
    %c0_i32_1 = arith.constant 0 : i32
    return %c0_i32, %c0_i32_0 : i32, i32
  }
  func.func @transform_11(%arg0: i32, %arg1: i32) -> (i32, i32) {
    %c0_i32 = arith.constant 0 : i32
    %c0_i32_0 = arith.constant 0 : i32
    %c0_i32_1 = arith.constant 0 : i32
    return %c0_i32, %c0_i32_0 : i32, i32
  }
  func.func @transform_12(%arg0: i32, %arg1: i32) -> (i32, i32) {
    %c0_i32 = arith.constant 0 : i32
    %c0_i32_0 = arith.constant 0 : i32
    %c0_i32_1 = arith.constant 0 : i32
    return %c0_i32, %c0_i32_0 : i32, i32
  }
  func.func @transform_13(%arg0: i32, %arg1: i32) -> (i32, i32) {
    %c0_i32 = arith.constant 0 : i32
    %c0_i32_0 = arith.constant 0 : i32
    %c0_i32_1 = arith.constant 0 : i32
    return %c0_i32, %c0_i32_0 : i32, i32
  }
  func.func @transform_14(%arg0: i32, %arg1: i32) -> (i32, i32, i32) {
    %c0_i32 = arith.constant 0 : i32
    %c0_i32_0 = arith.constant 0 : i32
    return %arg0, %arg1, %c0_i32 : i32, i32, i32
  }
}

module attributes {stable_mosaic.version = 11 : i64} {
  func.func @_segformer_attn_kernel(%arg0: i32, %arg1: i32, %arg2: memref<1x32x32xbf16, #tpu.memory_space<vmem>>, %arg3: memref<1x16x128xbf16, #tpu.memory_space<vmem>>, %arg4: memref<32x32xbf16, #tpu.memory_space<vmem>>, %arg5: memref<1x32xf32, #tpu.memory_space<vmem>>, %arg6: memref<32x32xbf16, #tpu.memory_space<vmem>>, %arg7: memref<1x32xf32, #tpu.memory_space<vmem>>, %arg8: memref<32x32xbf16, #tpu.memory_space<vmem>>, %arg9: memref<1x32xf32, #tpu.memory_space<vmem>>, %arg10: memref<128x32xbf16, #tpu.memory_space<vmem>>, %arg11: memref<1x32xf32, #tpu.memory_space<vmem>>, %arg12: memref<1x32xf32, #tpu.memory_space<vmem>>, %arg13: memref<1x32xf32, #tpu.memory_space<vmem>>, %arg14: memref<32x32xbf16, #tpu.memory_space<vmem>>, %arg15: memref<1x32xf32, #tpu.memory_space<vmem>>, %arg16: memref<1x32x32xf32, #tpu.memory_space<vmem>>, %arg17: memref<16x32xbf16, #tpu.memory_space<vmem>>, %arg18: memref<16x32xbf16, #tpu.memory_space<vmem>>, %arg19: memref<32x32xbf16, #tpu.memory_space<vmem>>) attributes {dimension_semantics = [#tpu.dimension_semantics<parallel>, #tpu.dimension_semantics<arbitrary>], iteration_bounds = array<i64: 2, 2>, scalar_prefetch = 0 : i64, scratch_operands = 3 : i64, tpu.core_type = #tpu.core_type<tc>, window_params = [{transform_indices = @transform_0, window_bounds = array<i64: 1, 32, 32>}, {transform_indices = @transform_1, window_bounds = array<i64: 1, 16, 128>}, {pipeline_mode = #tpu.pipeline_mode<synchronous>, transform_indices = @transform_2, window_bounds = array<i64: 32, 32>}, {pipeline_mode = #tpu.pipeline_mode<synchronous>, transform_indices = @transform_3, window_bounds = array<i64: 1, 32>}, {pipeline_mode = #tpu.pipeline_mode<synchronous>, transform_indices = @transform_4, window_bounds = array<i64: 32, 32>}, {pipeline_mode = #tpu.pipeline_mode<synchronous>, transform_indices = @transform_5, window_bounds = array<i64: 1, 32>}, {pipeline_mode = #tpu.pipeline_mode<synchronous>, transform_indices = @transform_6, window_bounds = array<i64: 32, 32>}, {pipeline_mode = #tpu.pipeline_mode<synchronous>, transform_indices = @transform_7, window_bounds = array<i64: 1, 32>}, {pipeline_mode = #tpu.pipeline_mode<synchronous>, transform_indices = @transform_8, window_bounds = array<i64: 128, 32>}, {pipeline_mode = #tpu.pipeline_mode<synchronous>, transform_indices = @transform_9, window_bounds = array<i64: 1, 32>}, {pipeline_mode = #tpu.pipeline_mode<synchronous>, transform_indices = @transform_10, window_bounds = array<i64: 1, 32>}, {pipeline_mode = #tpu.pipeline_mode<synchronous>, transform_indices = @transform_11, window_bounds = array<i64: 1, 32>}, {pipeline_mode = #tpu.pipeline_mode<synchronous>, transform_indices = @transform_12, window_bounds = array<i64: 32, 32>}, {pipeline_mode = #tpu.pipeline_mode<synchronous>, transform_indices = @transform_13, window_bounds = array<i64: 1, 32>}, {transform_indices = @transform_14, window_bounds = array<i64: 1, 32, 32>}]} {
    %c0_i32 = arith.constant 0 : i32
    %0 = arith.cmpi eq, %arg1, %c0_i32 : i32
    %1 = arith.extui %0 : i1 to i32
    %c0_i32_0 = arith.constant 0 : i32
    %2 = arith.cmpi ne, %1, %c0_i32_0 : i32
    scf.if %2 {
      %c0_36 = arith.constant 0 : index
      %c0_37 = arith.constant 0 : index
      %c0_38 = arith.constant 0 : index
      %56 = vector.load %arg3[%c0_36, %c0_37, %c0_38] : memref<1x16x128xbf16, #tpu.memory_space<vmem>>, vector<1x16x128xbf16>
      %57 = vector.shape_cast %56 : vector<1x16x128xbf16> to vector<16x128xbf16>
      %c0_39 = arith.constant 0 : index
      %c0_40 = arith.constant 0 : index
      %58 = vector.load %arg10[%c0_39, %c0_40] : memref<128x32xbf16, #tpu.memory_space<vmem>>, vector<128x32xbf16>
      %cst_41 = arith.constant dense<0.000000e+00> : vector<16x32xf32>
      %59 = tpu.matmul %57, %58, %cst_41 {dimension_numbers = #tpu.dot_dimension_numbers<[1], [0], [0], [1], [0, 0, 1, 1], [], []>} : vector<16x128xbf16>, vector<128x32xbf16>, vector<16x32xf32> -> vector<16x32xf32>
      %c0_42 = arith.constant 0 : index
      %c0_43 = arith.constant 0 : index
      %60 = vector.load %arg11[%c0_42, %c0_43] : memref<1x32xf32, #tpu.memory_space<vmem>>, vector<1x32xf32>
      %61 = vector.broadcast %60 : vector<1x32xf32> to vector<16x32xf32>
      %62 = arith.addf %59, %61 : vector<16x32xf32>
      %cst_44 = arith.constant dense<0.000000e+00> : vector<16xf32>
      %63 = vector.multi_reduction <add>, %62, %cst_44 [1] : vector<16x32xf32> to vector<16xf32>
      %64 = vector.shape_cast %63 : vector<16xf32> to vector<16x1xf32>
      %cst_45 = arith.constant 3.200000e+01 : f32
      %65 = vector.broadcast %cst_45 : f32 to vector<16x1xf32>
      %66 = arith.divf %64, %65 : vector<16x1xf32>
      %67 = vector.broadcast %66 : vector<16x1xf32> to vector<16x32xf32>
      %68 = arith.subf %62, %67 : vector<16x32xf32>
      %69 = arith.mulf %68, %68 : vector<16x32xf32>
      %cst_46 = arith.constant dense<0.000000e+00> : vector<16xf32>
      %70 = vector.multi_reduction <add>, %69, %cst_46 [1] : vector<16x32xf32> to vector<16xf32>
      %71 = vector.shape_cast %70 : vector<16xf32> to vector<16x1xf32>
      %cst_47 = arith.constant 3.200000e+01 : f32
      %72 = vector.broadcast %cst_47 : f32 to vector<16x1xf32>
      %73 = arith.divf %71, %72 : vector<16x1xf32>
      %74 = vector.broadcast %66 : vector<16x1xf32> to vector<16x32xf32>
      %75 = arith.subf %62, %74 : vector<16x32xf32>
      %cst_48 = arith.constant 9.99999974E-6 : f32
      %76 = vector.broadcast %cst_48 : f32 to vector<16x1xf32>
      %77 = arith.addf %73, %76 : vector<16x1xf32>
      %78 = math.rsqrt %77 : vector<16x1xf32>
      %79 = vector.broadcast %78 : vector<16x1xf32> to vector<16x32xf32>
      %80 = arith.mulf %75, %79 : vector<16x32xf32>
      %c0_49 = arith.constant 0 : index
      %c0_50 = arith.constant 0 : index
      %81 = vector.load %arg12[%c0_49, %c0_50] : memref<1x32xf32, #tpu.memory_space<vmem>>, vector<1x32xf32>
      %82 = vector.broadcast %81 : vector<1x32xf32> to vector<16x32xf32>
      %83 = arith.mulf %80, %82 : vector<16x32xf32>
      %c0_51 = arith.constant 0 : index
      %c0_52 = arith.constant 0 : index
      %84 = vector.load %arg13[%c0_51, %c0_52] : memref<1x32xf32, #tpu.memory_space<vmem>>, vector<1x32xf32>
      %85 = vector.broadcast %84 : vector<1x32xf32> to vector<16x32xf32>
      %86 = arith.addf %83, %85 : vector<16x32xf32>
      %87 = arith.truncf %86 : vector<16x32xf32> to vector<16x32xbf16>
      %c0_53 = arith.constant 0 : index
      %c0_54 = arith.constant 0 : index
      %88 = vector.load %arg6[%c0_53, %c0_54] : memref<32x32xbf16, #tpu.memory_space<vmem>>, vector<32x32xbf16>
      %cst_55 = arith.constant dense<0.000000e+00> : vector<16x32xf32>
      %89 = tpu.matmul %87, %88, %cst_55 {dimension_numbers = #tpu.dot_dimension_numbers<[1], [0], [0], [1], [0, 0, 1, 1], [], []>} : vector<16x32xbf16>, vector<32x32xbf16>, vector<16x32xf32> -> vector<16x32xf32>
      %c0_56 = arith.constant 0 : index
      %c0_57 = arith.constant 0 : index
      %90 = vector.load %arg7[%c0_56, %c0_57] : memref<1x32xf32, #tpu.memory_space<vmem>>, vector<1x32xf32>
      %91 = vector.broadcast %90 : vector<1x32xf32> to vector<16x32xf32>
      %92 = arith.addf %89, %91 : vector<16x32xf32>
      %93 = arith.truncf %92 : vector<16x32xf32> to vector<16x32xbf16>
      %c0_58 = arith.constant 0 : index
      %c0_59 = arith.constant 0 : index
      %94 = vector.load %arg17[%c0_58, %c0_59] : memref<16x32xbf16, #tpu.memory_space<vmem>>, vector<16x32xbf16>
      tpu.vector_store %arg17[%c0_58, %c0_59], %93 {strides = array<i32>} : memref<16x32xbf16, #tpu.memory_space<vmem>>, vector<16x32xbf16>,
      %c0_60 = arith.constant 0 : index
      %c0_61 = arith.constant 0 : index
      %95 = vector.load %arg8[%c0_60, %c0_61] : memref<32x32xbf16, #tpu.memory_space<vmem>>, vector<32x32xbf16>
      %cst_62 = arith.constant dense<0.000000e+00> : vector<16x32xf32>
      %96 = tpu.matmul %87, %95, %cst_62 {dimension_numbers = #tpu.dot_dimension_numbers<[1], [0], [0], [1], [0, 0, 1, 1], [], []>} : vector<16x32xbf16>, vector<32x32xbf16>, vector<16x32xf32> -> vector<16x32xf32>
      %c0_63 = arith.constant 0 : index
      %c0_64 = arith.constant 0 : index
      %97 = vector.load %arg9[%c0_63, %c0_64] : memref<1x32xf32, #tpu.memory_space<vmem>>, vector<1x32xf32>
      %98 = vector.broadcast %97 : vector<1x32xf32> to vector<16x32xf32>
      %99 = arith.addf %96, %98 : vector<16x32xf32>
      %100 = arith.truncf %99 : vector<16x32xf32> to vector<16x32xbf16>
      %c0_65 = arith.constant 0 : index
      %c0_66 = arith.constant 0 : index
      %101 = vector.load %arg18[%c0_65, %c0_66] : memref<16x32xbf16, #tpu.memory_space<vmem>>, vector<16x32xbf16>
      tpu.vector_store %arg18[%c0_65, %c0_66], %100 {strides = array<i32>} : memref<16x32xbf16, #tpu.memory_space<vmem>>, vector<16x32xbf16>,
    } else {
    }
    %c0 = arith.constant 0 : index
    %c0_1 = arith.constant 0 : index
    %c0_2 = arith.constant 0 : index
    %3 = vector.load %arg2[%c0, %c0_1, %c0_2] : memref<1x32x32xbf16, #tpu.memory_space<vmem>>, vector<1x32x32xbf16>
    %4 = vector.shape_cast %3 : vector<1x32x32xbf16> to vector<32x32xbf16>
    %c0_3 = arith.constant 0 : index
    %c0_4 = arith.constant 0 : index
    %5 = vector.load %arg4[%c0_3, %c0_4] : memref<32x32xbf16, #tpu.memory_space<vmem>>, vector<32x32xbf16>
    %cst = arith.constant dense<0.000000e+00> : vector<32x32xf32>
    %6 = tpu.matmul %4, %5, %cst {dimension_numbers = #tpu.dot_dimension_numbers<[1], [0], [0], [1], [0, 0, 1, 1], [], []>} : vector<32x32xbf16>, vector<32x32xbf16>, vector<32x32xf32> -> vector<32x32xf32>
    %c0_5 = arith.constant 0 : index
    %c0_6 = arith.constant 0 : index
    %7 = vector.load %arg5[%c0_5, %c0_6] : memref<1x32xf32, #tpu.memory_space<vmem>>, vector<1x32xf32>
    %8 = vector.broadcast %7 : vector<1x32xf32> to vector<32x32xf32>
    %9 = arith.addf %6, %8 : vector<32x32xf32>
    %10 = arith.truncf %9 : vector<32x32xf32> to vector<32x32xbf16>
    %11 = vector.extract_strided_slice %10 {offsets = [0, 0], sizes = [32, 16], strides = [1, 1]} : vector<32x32xbf16> to vector<32x16xbf16>
    %c0_7 = arith.constant 0 : index
    %c0_8 = arith.constant 0 : index
    %12 = vector.load %arg17[%c0_7, %c0_8] : memref<16x32xbf16, #tpu.memory_space<vmem>>, vector<16x16xbf16>
    %cst_9 = arith.constant dense<0.000000e+00> : vector<32x16xf32>
    %13 = tpu.matmul %11, %12, %cst_9 {dimension_numbers = #tpu.dot_dimension_numbers<[1], [1], [0], [0], [0, 0, 1, 0], [], []>} : vector<32x16xbf16>, vector<16x16xbf16>, vector<32x16xf32> -> vector<32x16xf32>
    %cst_10 = arith.constant dense<0xFF800000> : vector<32xf32>
    %14 = vector.multi_reduction <maximumf>, %13, %cst_10 [1] : vector<32x16xf32> to vector<32xf32>
    %15 = vector.shape_cast %14 : vector<32xf32> to vector<32x1xf32>
    %16 = vector.broadcast %15 : vector<32x1xf32> to vector<32x16xf32>
    %17 = arith.subf %13, %16 : vector<32x16xf32>
    %18 = math.exp %17 : vector<32x16xf32>
    %cst_11 = arith.constant dense<0.000000e+00> : vector<32xf32>
    %19 = vector.multi_reduction <add>, %18, %cst_11 [1] : vector<32x16xf32> to vector<32xf32>
    %20 = vector.shape_cast %19 : vector<32xf32> to vector<32x1xf32>
    %21 = arith.truncf %18 : vector<32x16xf32> to vector<32x16xbf16>
    %c0_12 = arith.constant 0 : index
    %c0_13 = arith.constant 0 : index
    %22 = vector.load %arg18[%c0_12, %c0_13] : memref<16x32xbf16, #tpu.memory_space<vmem>>, vector<16x16xbf16>
    %cst_14 = arith.constant dense<0.000000e+00> : vector<32x16xf32>
    %23 = tpu.matmul %21, %22, %cst_14 {dimension_numbers = #tpu.dot_dimension_numbers<[1], [0], [0], [1], [0, 0, 1, 1], [], []>} : vector<32x16xbf16>, vector<16x16xbf16>, vector<32x16xf32> -> vector<32x16xf32>
    %24 = tpu.reciprocal %20 : vector<32x1xf32> -> vector<32x1xf32>
    %25 = vector.broadcast %24 : vector<32x1xf32> to vector<32x16xf32>
    %26 = arith.mulf %23, %25 : vector<32x16xf32>
    %27 = arith.truncf %26 : vector<32x16xf32> to vector<32x16xbf16>
    %c0_15 = arith.constant 0 : index
    %c0_16 = arith.constant 0 : index
    %28 = vector.load %arg19[%c0_15, %c0_16] : memref<32x32xbf16, #tpu.memory_space<vmem>>, vector<32x16xbf16>
    tpu.vector_store %arg19[%c0_15, %c0_16], %27 {strides = array<i32>} : memref<32x32xbf16, #tpu.memory_space<vmem>>, vector<32x16xbf16>,
    %29 = vector.extract_strided_slice %10 {offsets = [0, 16], sizes = [32, 16], strides = [1, 1]} : vector<32x32xbf16> to vector<32x16xbf16>
    %c0_17 = arith.constant 0 : index
    %c16 = arith.constant 16 : index
    %30 = vector.load %arg17[%c0_17, %c16] : memref<16x32xbf16, #tpu.memory_space<vmem>>, vector<16x16xbf16>
    %cst_18 = arith.constant dense<0.000000e+00> : vector<32x16xf32>
    %31 = tpu.matmul %29, %30, %cst_18 {dimension_numbers = #tpu.dot_dimension_numbers<[1], [1], [0], [0], [0, 0, 1, 0], [], []>} : vector<32x16xbf16>, vector<16x16xbf16>, vector<32x16xf32> -> vector<32x16xf32>
    %cst_19 = arith.constant dense<0xFF800000> : vector<32xf32>
    %32 = vector.multi_reduction <maximumf>, %31, %cst_19 [1] : vector<32x16xf32> to vector<32xf32>
    %33 = vector.shape_cast %32 : vector<32xf32> to vector<32x1xf32>
    %34 = vector.broadcast %33 : vector<32x1xf32> to vector<32x16xf32>
    %35 = arith.subf %31, %34 : vector<32x16xf32>
    %36 = math.exp %35 : vector<32x16xf32>
    %cst_20 = arith.constant dense<0.000000e+00> : vector<32xf32>
    %37 = vector.multi_reduction <add>, %36, %cst_20 [1] : vector<32x16xf32> to vector<32xf32>
    %38 = vector.shape_cast %37 : vector<32xf32> to vector<32x1xf32>
    %39 = arith.truncf %36 : vector<32x16xf32> to vector<32x16xbf16>
    %c0_21 = arith.constant 0 : index
    %c16_22 = arith.constant 16 : index
    %40 = vector.load %arg18[%c0_21, %c16_22] : memref<16x32xbf16, #tpu.memory_space<vmem>>, vector<16x16xbf16>
    %cst_23 = arith.constant dense<0.000000e+00> : vector<32x16xf32>
    %41 = tpu.matmul %39, %40, %cst_23 {dimension_numbers = #tpu.dot_dimension_numbers<[1], [0], [0], [1], [0, 0, 1, 1], [], []>} : vector<32x16xbf16>, vector<16x16xbf16>, vector<32x16xf32> -> vector<32x16xf32>
    %42 = tpu.reciprocal %38 : vector<32x1xf32> -> vector<32x1xf32>
    %43 = vector.broadcast %42 : vector<32x1xf32> to vector<32x16xf32>
    %44 = arith.mulf %41, %43 : vector<32x16xf32>
    %45 = arith.truncf %44 : vector<32x16xf32> to vector<32x16xbf16>
    %c0_24 = arith.constant 0 : index
    %c16_25 = arith.constant 16 : index
    %46 = vector.load %arg19[%c0_24, %c16_25] : memref<32x32xbf16, #tpu.memory_space<vmem>>, vector<32x16xbf16>
    tpu.vector_store %arg19[%c0_24, %c16_25], %45 {strides = array<i32>} : memref<32x32xbf16, #tpu.memory_space<vmem>>, vector<32x16xbf16>,
    %c0_26 = arith.constant 0 : index
    %c0_27 = arith.constant 0 : index
    %47 = vector.load %arg19[%c0_26, %c0_27] : memref<32x32xbf16, #tpu.memory_space<vmem>>, vector<32x32xbf16>
    %c0_28 = arith.constant 0 : index
    %c0_29 = arith.constant 0 : index
    %48 = vector.load %arg14[%c0_28, %c0_29] : memref<32x32xbf16, #tpu.memory_space<vmem>>, vector<32x32xbf16>
    %cst_30 = arith.constant dense<0.000000e+00> : vector<32x32xf32>
    %49 = tpu.matmul %47, %48, %cst_30 {dimension_numbers = #tpu.dot_dimension_numbers<[1], [0], [0], [1], [0, 0, 1, 1], [], []>} : vector<32x32xbf16>, vector<32x32xbf16>, vector<32x32xf32> -> vector<32x32xf32>
    %c0_31 = arith.constant 0 : index
    %c0_32 = arith.constant 0 : index
    %50 = vector.load %arg15[%c0_31, %c0_32] : memref<1x32xf32, #tpu.memory_space<vmem>>, vector<1x32xf32>
    %51 = vector.broadcast %50 : vector<1x32xf32> to vector<32x32xf32>
    %52 = arith.addf %49, %51 : vector<32x32xf32>
    %c0_33 = arith.constant 0 : index
    %c0_34 = arith.constant 0 : index
    %c0_35 = arith.constant 0 : index
    %53 = vector.load %arg16[%c0_33, %c0_34, %c0_35] : memref<1x32x32xf32, #tpu.memory_space<vmem>>, vector<1x32x32xf32>
    %54 = vector.shape_cast %53 : vector<1x32x32xf32> to vector<32x32xf32>
    %55 = vector.shape_cast %52 : vector<32x32xf32> to vector<1x32x32xf32>
    tpu.vector_store %arg16[%c0_33, %c0_34, %c0_35], %55 {strides = array<i32>} : memref<1x32x32xf32, #tpu.memory_space<vmem>>, vector<1x32x32xf32>,
    return
  }
  func.func @transform_0(%arg0: i32, %arg1: i32) -> (i32, i32, i32) {
    %c0_i32 = arith.constant 0 : i32
    %c0_i32_0 = arith.constant 0 : i32
    return %arg0, %arg1, %c0_i32 : i32, i32, i32
  }
  func.func @transform_1(%arg0: i32, %arg1: i32) -> (i32, i32, i32) {
    %c0_i32 = arith.constant 0 : i32
    %c0_i32_0 = arith.constant 0 : i32
    %c0_i32_1 = arith.constant 0 : i32
    return %arg0, %c0_i32, %c0_i32_0 : i32, i32, i32
  }
  func.func @transform_2(%arg0: i32, %arg1: i32) -> (i32, i32) {
    %c0_i32 = arith.constant 0 : i32
    %c0_i32_0 = arith.constant 0 : i32
    %c0_i32_1 = arith.constant 0 : i32
    return %c0_i32, %c0_i32_0 : i32, i32
  }
  func.func @transform_3(%arg0: i32, %arg1: i32) -> (i32, i32) {
    %c0_i32 = arith.constant 0 : i32
    %c0_i32_0 = arith.constant 0 : i32
    %c0_i32_1 = arith.constant 0 : i32
    return %c0_i32, %c0_i32_0 : i32, i32
  }
  func.func @transform_4(%arg0: i32, %arg1: i32) -> (i32, i32) {
    %c0_i32 = arith.constant 0 : i32
    %c0_i32_0 = arith.constant 0 : i32
    %c0_i32_1 = arith.constant 0 : i32
    return %c0_i32, %c0_i32_0 : i32, i32
  }
  func.func @transform_5(%arg0: i32, %arg1: i32) -> (i32, i32) {
    %c0_i32 = arith.constant 0 : i32
    %c0_i32_0 = arith.constant 0 : i32
    %c0_i32_1 = arith.constant 0 : i32
    return %c0_i32, %c0_i32_0 : i32, i32
  }
  func.func @transform_6(%arg0: i32, %arg1: i32) -> (i32, i32) {
    %c0_i32 = arith.constant 0 : i32
    %c0_i32_0 = arith.constant 0 : i32
    %c0_i32_1 = arith.constant 0 : i32
    return %c0_i32, %c0_i32_0 : i32, i32
  }
  func.func @transform_7(%arg0: i32, %arg1: i32) -> (i32, i32) {
    %c0_i32 = arith.constant 0 : i32
    %c0_i32_0 = arith.constant 0 : i32
    %c0_i32_1 = arith.constant 0 : i32
    return %c0_i32, %c0_i32_0 : i32, i32
  }
  func.func @transform_8(%arg0: i32, %arg1: i32) -> (i32, i32) {
    %c0_i32 = arith.constant 0 : i32
    %c0_i32_0 = arith.constant 0 : i32
    %c0_i32_1 = arith.constant 0 : i32
    return %c0_i32, %c0_i32_0 : i32, i32
  }
  func.func @transform_9(%arg0: i32, %arg1: i32) -> (i32, i32) {
    %c0_i32 = arith.constant 0 : i32
    %c0_i32_0 = arith.constant 0 : i32
    %c0_i32_1 = arith.constant 0 : i32
    return %c0_i32, %c0_i32_0 : i32, i32
  }
  func.func @transform_10(%arg0: i32, %arg1: i32) -> (i32, i32) {
    %c0_i32 = arith.constant 0 : i32
    %c0_i32_0 = arith.constant 0 : i32
    %c0_i32_1 = arith.constant 0 : i32
    return %c0_i32, %c0_i32_0 : i32, i32
  }
  func.func @transform_11(%arg0: i32, %arg1: i32) -> (i32, i32) {
    %c0_i32 = arith.constant 0 : i32
    %c0_i32_0 = arith.constant 0 : i32
    %c0_i32_1 = arith.constant 0 : i32
    return %c0_i32, %c0_i32_0 : i32, i32
  }
  func.func @transform_12(%arg0: i32, %arg1: i32) -> (i32, i32) {
    %c0_i32 = arith.constant 0 : i32
    %c0_i32_0 = arith.constant 0 : i32
    %c0_i32_1 = arith.constant 0 : i32
    return %c0_i32, %c0_i32_0 : i32, i32
  }
  func.func @transform_13(%arg0: i32, %arg1: i32) -> (i32, i32) {
    %c0_i32 = arith.constant 0 : i32
    %c0_i32_0 = arith.constant 0 : i32
    %c0_i32_1 = arith.constant 0 : i32
    return %c0_i32, %c0_i32_0 : i32, i32
  }
  func.func @transform_14(%arg0: i32, %arg1: i32) -> (i32, i32, i32) {
    %c0_i32 = arith.constant 0 : i32
    %c0_i32_0 = arith.constant 0 : i32
    return %arg0, %arg1, %c0_i32 : i32, i32, i32
  }
}

</mosaic_0001>

<bundles_post_ra>
// kernel: tpu_custom_call.1
= control target key start
LH: loop header
LB: loop body
LE: loop exit
PB: predicated region body
PF: predicated region fallthrough
CT: control target
= control target key end

     0   :  { %s1859_s29 = smov 0   ;;  %s1861_s30 = smov 0   ;;  %s2063_s0 = inlined_call_operand.vmem [shape: bf16[2,64,32], index: 0, kind: input, shape index: {}]   ;;  %s2064_s1 = inlined_call_operand.vmem [shape: bf16[2,16,128], index: 1, kind: input, shape index: {}]   ;;  %s2065_s2 = inlined_call_operand.vmem [shape: bf16[32,32], index: 2, kind: input, shape index: {}]   ;;  %s2066_s3 = inlined_call_operand.vmem [shape: f32[1,32], index: 3, kind: input, shape index: {}]   ;;  %s2067_s4 = inlined_call_operand.vmem [shape: bf16[32,32], index: 4, kind: input, shape index: {}]   ;;  %s2068_s5 = inlined_call_operand.vmem [shape: f32[1,32], index: 5, kind: input, shape index: {}]   ;;  %s2069_s6 = inlined_call_operand.vmem [shape: bf16[32,32], index: 6, kind: input, shape index: {}]   ;;  %s2070_s7 = inlined_call_operand.vmem [shape: f32[1,32], index: 7, kind: input, shape index: {}]   ;;  %s2071_s8 = inlined_call_operand.vmem [shape: bf16[128,32], index: 8, kind: input, shape index: {}]   ;;  %s2072_s9 = inlined_call_operand.vmem [shape: f32[1,32], index: 9, kind: input, shape index: {}]   ;;  %s2073_s10 = inlined_call_operand.vmem [shape: f32[1,32], index: 10, kind: input, shape index: {}]   ;;  %s2074_s11 = inlined_call_operand.vmem [shape: f32[1,32], index: 11, kind: input, shape index: {}]   ;;  %s2075_s12 = inlined_call_operand.vmem [shape: bf16[32,32], index: 12, kind: input, shape index: {}]   ;;  %s2076_s13 = inlined_call_operand.vmem [shape: f32[1,32], index: 13, kind: input, shape index: {}]   ;;  %s2077_s14 = inlined_call_operand.vmem [shape: f32[2,64,32], index: 14, kind: output, shape index: {}]  }
   0x1   :  { %s1863_s15 = smov 0   ;;  %s1865_s16 = smov 0  }
   0x2   :  { %s1867_s17 = smov 0  }
   0x3 LB: > { %2081 = sst [smem:[#allocation5_spill]] %s1770_s15  ;;  %s33_s18 = sadd.s32 1, %s1770_s15  ;;  %s1778_s17 = sphi %s1867_s17, %s24_s17   ;;  %s1774_s16 = sphi %s1865_s16, %s2090_s16   ;;  %s1770_s15 = sphi %s1863_s15, %s2089_s15   ;;  %s1766_s30 = sphi %s1861_s30, %s2088_s30   ;;  %s1762_s29 = sphi %s1859_s29, %s2087_s29  }
   0x4   : > { %2082 = sst [smem:[#allocation6_spill]] %s1774_s16  ;;  %s36_s19 = sadd.s32 1, %s1774_s16 }
   0x5   : > { %2083 = sst [smem:[#allocation7_spill]] %s1778_s17  ;;  %p34_p0 = scmp.ge.s32.totalorder %s33_s18, 2 }
   0x6   : > { %p1475_p1 = scmp.ge.s32.totalorder %s1778_s17, 1  ;;  %p443_p2 = scmp.lt.s32.totalorder %s1778_s17, 5 }
   0x7   : > { %s2092_s18 = smov (%p34_p0, %s33_s18), 0  ;;  %s2094_s19 = smov (!%p34_p0, %s36_s19), %s1774_s16 }
   0x8   : > { %2084 = sst [smem:[#allocation8_spill]] %s2092_s18  ;;  %p444_p3 = pnand %p1475_p1, %p443_p2 }
   0x9   : > { %p38_p4 = scmp.ge.s32.totalorder %s2094_s19, 2  ;;  %s1476_s20 = sshll.u32 (!%p444_p3), %s1762_s29, 2 }
   0xa   : > { %447 = sbr.rel (%p444_p3) target bundleno = 2098 (0x832), region = 76  ;;  %p503_p5 = scmp.lt.s32.totalorder (!%p444_p3), %s1766_s30, 1 }
   0xb   : > { %s2096_s19 = smov (%p38_p4, %s2094_s19), 0  ;;  %p505_p6 = scmp.lt.s32.totalorder (!%p444_p3), %s1476_s20, 7 }
   0xc   : > { %2085 = sst [smem:[#allocation9_spill]] %s2096_s19  ;;  %p1484_p7 = scmp.ne.s32.totalorder (!%p444_p3), %s1762_s29, 0 }
  0x11   : > { %s2098_s30 = smov (!%p503_p5, %s1766_s30), 1  ;;  %s2100_s20 = smov (!%p505_p6, %s1476_s20), 7 }
  0x12   : > { %s1477_s21 = sshll.u32 %s2098_s30, 3  ;;  %531 = sbr.rel (%p1484_p7) target bundleno = 811 (0x32b), region = 80  ;;  %v1685_v0 = vld [vmem:[%s2071_s8] sm:$0xff] (!%p1484_p7)   ;;  %v1780_v1 = vmov (!%p1484_p7), 0.0   ;;  %v1686_v2 = vld [vmem:[%s2071_s8 + $0x8] sm:$0xff] (!%p1484_p7)   ;;  %vm1781_vm0 = vmmov (!%p1484_p7), 0  }
  0x13   : > { %s508_s22 = sadd.s32 %s1477_s21, %s2100_s20  ;;  %s1892_s25 = scalar_lea.vmem %s2064_s1, %s1477_s21  ;;  %1563 = vmatprep.subr.bf16.mxu0 (!%p1484_p7), %v1780_v1  ;;  %1583 = vmatprep.subr.bf16.mxu1 (!%p1484_p7), %v1780_v1  ;;  %v1687_v3 = vld [vmem:[%s2071_s8 + $0x10] sm:$0xff] (!%p1484_p7)   ;;  %v1688_v4 = vld [vmem:[%s2071_s8 + $0x18] sm:$0xff] (!%p1484_p7)   ;;  %v1689_v5 = vld [vmem:[%s2071_s8 + $0x20] sm:$0xff] (!%p1484_p7)   ;;  %vm652_vm1 = vcmask (!%p1484_p7), 261120  }
  0x14   : > { %s1478_s26 = sshll.u32 %s508_s22, 2  ;;  %s1483_s27 = sshll.u32 %s508_s22, 3  ;;  %1564 = vmatpush3.bf16.msra.mxu0 (!%p1484_p7), %v1685_v0  ;;  %1579 = vmatprep.mubr.msk.bf16.mxu0 (!%p1484_p7), %vm1781_vm0, %v1780_v1  ;;  %v1690_v6 = vld [vmem:[%s2071_s8 + $0x28] sm:$0xff] (!%p1484_p7)   ;;  %v1691_v7 = vld [vmem:[%s2071_s8 + $0x30] sm:$0xff] (!%p1484_p7)   ;;  %v1692_v8 = vld [vmem:[%s2071_s8 + $0x38] sm:$0xff] (!%p1484_p7)  }
  0x15   : > { %s1897_s16 = scalar_lea.vmem %s2063_s0, %s1478_s26  ;;  %s1902_s17 = scalar_lea.vmem %s2077_s14, %s1483_s27  ;;  %1565 = vmatprep.subr.bf16.mxu0 (!%p1484_p7), %v1780_v1  ;;  %1587 = vmatprep.mubr.msk.bf16.mxu1 (!%p1484_p7), %vm1781_vm0, %v1780_v1  ;;  %v1693_v9 = vld [vmem:[%s1892_s25] sm:$0xff] (!%p1484_p7)   ;;  %v1695_v30 = vld [vmem:[%s2067_s4 + $0x8] sm:$0xff] (!%p1484_p7)  }
  0x16   : > { %v1485_v10 = vld [vmem:[%s2072_s9] ss:$0 sm:$0xff] (!%p1484_p7)  ;;  %v1697_v49 = vld [vmem:[%s2069_s6 + $0x8] sm:$0xff] (!%p1484_p7)  }
  0x17   : > { %v1694_v29 = vld [vmem:[%s2067_s4] sm:$0xff] (!%p1484_p7)  }
  0x18   : > { %1566 = vmatpush3.bf16.msra.mxu0 (!%p1484_p7), %v1686_v2  ;;  %1584 = vmatpush3.bf16.msra.mxu1 (!%p1484_p7), %v1694_v29  ;;  %v1495_v39 = vld [vmem:[%s2073_s10] ss:$0 sm:$0xff] (!%p1484_p7) }
  0x19   : > { %1567 = vmatprep.subr.bf16.mxu0 %v1780_v1  ;;  %1585 = vmatprep.subr.bf16.mxu1 %v1780_v1  ;;  %v1496_v43 = vld [vmem:[%s2074_s11] ss:$0 sm:$0xff] }
  0x1a   : > { %v1696_v47 = vld [vmem:[%s2069_s6] sm:$0xff]  }
  0x1b   : > { %v1497_v50 = vld [vmem:[%s2068_s5] ss:$0 sm:$0xff] }
  0x1c   : > { %1568 = vmatpush3.bf16.msra.mxu0 %v1687_v3  ;;  %1586 = vmatpush3.bf16.msra.mxu1 %v1695_v30  ;;  %v1501_v58 = vld [vmem:[%s2070_s7] ss:$0 sm:$0xff] }
  0x1d   : > { %1569 = vmatprep.subr.bf16.mxu0 %v1780_v1  ;;  %1591 = vmatprep.subr.bf16.mxu1 %v1780_v1 }
  0x20   : > { %1570 = vmatpush3.bf16.msra.mxu0 %v1688_v4 }
  0x21   : > { %1571 = vmatprep.subr.bf16.mxu0 %v1780_v1 }
  0x24   : > { %1572 = vmatpush3.bf16.msra.mxu0 %v1689_v5 }
  0x25   : > { %1573 = vmatprep.subr.bf16.mxu0 %v1780_v1 }
  0x28   : > { %1574 = vmatpush3.bf16.msra.mxu0 %v1690_v6 }
  0x29   : > { %1575 = vmatprep.subr.bf16.mxu0 %v1780_v1 }
  0x2c   : > { %1576 = vmatpush3.bf16.msra.mxu0 %v1691_v7 }
  0x2d   : > { %1577 = vmatprep.subr.bf16.mxu0 %v1780_v1 }
  0x30   : > { %1578 = vmatpush3.bf16.msra.mxu0 %v1692_v8 }
  0x33   : > { %1580 = vmatmul.mubr.bf16.vlgmr.msra.gmra.mrb[0].mxu0 %v1693_v9 }
 0x106   : > { %v645_v11 = vpop.f32.mrb[0].mxu0 }
 0x107   : > { %v646_v12 = vadd.f32 %v1485_v10, %v645_v11  ;;  %v1581_v13 = vpop.f32.mrb[1].mxu0 }
 0x108   : > { %v648_v14 = vpop.f32.mrb[2].mxu0 }
 0x109   : > { %v649_v15 = vadd.f32 %v1485_v10, %v648_v14  ;;  %v1582_v16 = vpop.f32.mrb[3].mxu0  ;;  %v653_v17 = vsel %vm652_vm1, %v646_v12, 0.0 }
 0x10a   : > { %654 = vadd.xlane.f32.xlu0 %v653_v17 }
 0x10b   : > { %v656_v18 = vsel %vm652_vm1, %v649_v15, 0.0 }
 0x10e   : > { %657 = vadd.xlane.f32.xlu0 %v656_v18 }
 0x197   : > { %v655_v19 = vpop.xlane.xlu0 %654 }
 0x198   : > { %v660_v20 = vmul.f32 0.03125, %v655_v19 }
 0x19a   : > { %v662_v21 = vsub.f32 %v646_v12, %v660_v20 }
 0x19b   : > { %v658_v22 = vpop.xlane.xlu0 %657 }
 0x19c   : > { %v661_v23 = vmul.f32 0.03125, %v658_v22  ;;  %v664_v24 = vmul.f32 %v662_v21, %v662_v21 }
 0x19e   : > { %v663_v25 = vsub.f32 %v649_v15, %v661_v23  ;;  %v666_v26 = vsel %vm652_vm1, %v664_v24, 0.0 }
 0x19f   : > { %667 = vadd.xlane.f32.xlu1 %v666_v26 }
 0x1a0   : > { %v665_v27 = vmul.f32 %v663_v25, %v663_v25 }
 0x1a2   : > { %v669_v28 = vsel %vm652_vm1, %v665_v27, 0.0 }
 0x1a3   : > { %670 = vadd.xlane.f32.xlu1 %v669_v28 }
 0x22c   : > { %v668_v31 = vpop.xlane.xlu1 %667 }
 0x22d   : > { %v672_v32 = vmul.f32 0.03125, %v668_v31 }
 0x22f   : > { %v674_v33 = vadd.f32 1e-05, %v672_v32 }
 0x230   : > { %v671_v34 = vpop.xlane.xlu1 %670 }
 0x231   : > { %1698 = vrsqrt.f32 %v674_v33  ;;  %v673_v35 = vmul.f32 0.03125, %v671_v34 }
 0x233   : > { %v675_v36 = vadd.f32 1e-05, %v673_v35 }
 0x235   : > { %1700 = vrsqrt.f32 %v675_v36 }
 0x23b   : > { %v1699_v37 = vpop.eup %1698 }
 0x23c   : > { %v678_v38 = vmul.f32 %v1699_v37, %v662_v21 }
 0x23e   : > { %v687_v42 = vmul.f32 %v1495_v39, %v678_v38 }
 0x23f   : > { %v1701_v40 = vpop.eup %1700 }
 0x240   : > { %v679_v41 = vmul.f32 %v1701_v40, %v663_v25  ;;  %v696_v45 = vadd.f32 %v1496_v43, %v687_v42 }
 0x242   : > { %v688_v44 = vmul.f32 %v1495_v39, %v679_v41 }
 0x244   : > { %v697_v46 = vadd.f32 %v1496_v43, %v688_v44 }
 0x246   : > { %v698_v48 = vpack.c.bf16 %v697_v46, %v696_v45 }
 0x248   : > { %1588 = vmatmul.mubr.msk.bf16.vlgmr.msra.gmra.mrb[0].mxu1 %vm652_vm1, %v698_v48 }
 0x249   : > { %1592 = vmatpush3.bf16.msra.mxu1 %v1696_v47  ;;  %1595 = vmatprep.mubr.msk.bf16.mxu1 %vm1781_vm0, %v1780_v1 }
 0x24a   : > { %1593 = vmatprep.subr.bf16.mxu1 %v1780_v1 }
 0x24d   : > { %1594 = vmatpush3.bf16.msra.mxu1 %v1697_v49 }
 0x250   : > { %1596 = vmatmul.mubr.msk.bf16.vlgmr.msra.gmra.mrb[4].mxu1 %vm652_vm1, %v698_v48 }
 0x31b   : > { %v759_v51 = vpop.f32.mrb[0].mxu1 }
 0x31c   : > { %v1589_v52 = vpop.f32.mrb[1].mxu1  ;;  %v760_v54 = vadd.f32 %v1497_v50, %v759_v51 }
 0x31d   : > { %v762_v53 = vpop.f32.mrb[2].mxu1 }
 0x31e   : > { %v763_v55 = vadd.f32 %v1497_v50, %v762_v53  ;;  %v1590_v56 = vpop.f32.mrb[3].mxu1 }
 0x320   : > { %v766_v57 = vpack.c.bf16 %v763_v55, %v760_v54 }
 0x322   : > { %767 = vst.msk [vmem:[#allocation2] sm:$0xff] %vm652_vm1, %v766_v57 }
 0x323   : > { %v825_v59 = vpop.f32.mrb[4].mxu1 }
 0x324   : > { %v1597_v60 = vpop.f32.mrb[5].mxu1  ;;  %v826_v62 = vadd.f32 %v1501_v58, %v825_v59 }
 0x325   : > { %v828_v61 = vpop.f32.mrb[6].mxu1 }
 0x326   : > { %v829_v63 = vadd.f32 %v1501_v58, %v828_v61  ;;  %v1598_v0 = vpop.f32.mrb[7].mxu1 }
 0x328   : > { %v832_v1 = vpack.c.bf16 %v829_v63, %v826_v62 }
 0x32a   : > { %833 = vst.msk [vmem:[#allocation3] sm:$0xff] %vm652_vm1, %v832_v1 }
 0x32b PF: > { %v1702_v2 = vld [vmem:[%s2065_s2] sm:$0xff]   ;;  %v1703_v3 = vld [vmem:[%s2065_s2 + $0x8] sm:$0xff]   ;;  %vm871_vm2 = vcmask 261120   ;;  %s1782_s26 = smov 112   ;;  %vm930_vm3 = vcmask 130048   ;;  %s1783_s21 = smov 16  }
 0x32c   : > { %1599 = vmatprep.subr.bf16.mxu0 %v1702_v2  ;;  %v1704_v4 = vld [vmem:[%s1897_s16] sm:$0xff]   ;;  %v1705_v6 = vld [vmem:[%s1897_s16 + $0x8] sm:$0xff]   ;;  %vm1279_vm4 = vcmask 261248  }
 0x32d   : > { %1600 = vmatpush3.bf16.msra.mxu0 %v1702_v2  ;;  %1603 = vmatprep.mubr.msk.bf16.mxu0 %vm871_vm2, %v1704_v4  ;;  %v1095_v5 = vld [vmem:[#allocation2] sm:$0xff] }
 0x32e   : > { %1601 = vmatprep.subr.bf16.mxu0 %v1703_v3  ;;  %1103 = vrot.lane.b32.xlu0 %v1095_v5, %s1782_s26  ;;  %v938_v7 = vsel %vm930_vm3, %v1095_v5, 0  ;;  %v1505_v10 = vld [vmem:[%s2066_s3] ss:$0 sm:$0xff] }
 0x32f   : > { %1639 = vmatprep.subr.msk.bf16.mxu1 %vm930_vm3, %v1095_v5 }
 0x330   : > { %1608 = vmatpush3.bf16.xpose.msra.mxu1 %v938_v7 }
 0x331   : > { %1602 = vmatpush3.bf16.msra.mxu0 %v1703_v3  ;;  %v1201_v31 = vld [vmem:[#allocation3] sm:$0xff] }
 0x332   : > { %1613 = vmatprep.subr.bf16.mxu0 %v1201_v31 }
 0x334   : > { %1604 = vmatmul.mubr.msk.bf16.vlgmr.msra.gmra.mrb[0].mxu0 %vm871_vm2, %v1705_v6 }
 0x335   : > { %1614 = vmatpush3.bf16.msra.mxu0 %v1201_v31 }
 0x3a0   : > { %v1104_v8 = vpop.permute.xlu0 %1103 }
 0x3a1   : > { %1640 = vmatprep.subr.msk.bf16.mxu1 %vm930_vm3, %v1104_v8  ;;  %v1112_v20 = vsel %vm930_vm3, %v1104_v8, 0 }
 0x407   : > { %v1605_v9 = vpop.f32.mrb[0].mxu0 }
 0x408   : > { %v912_v11 = vpop.f32.mrb[1].mxu0  ;;  %v921_v13 = vadd.f32 %v1605_v9, %v1505_v10 }
 0x409   : > { %v1606_v12 = vpop.f32.mrb[2].mxu0  ;;  %v913_v16 = vadd.f32 %v1505_v10, %v912_v11 }
 0x40a   : > { %v924_v14 = vadd.f32 %v1606_v12, %v1505_v10  ;;  %v915_v15 = vpop.f32.mrb[3].mxu0 }
 0x40b   : > { %v916_v17 = vadd.f32 %v1505_v10, %v915_v15 }
 0x40c   : > { %v928_v18 = vpack.c.bf16 %v924_v14, %v921_v13 }
 0x40d   : > { %v927_v19 = vpack.c.bf16 %v916_v17, %v913_v16 }
 0x40e   : > { %1100 = vrot.lane.b32.xlu1 %v928_v18, %s1782_s26 }
 0x40f   : > { %1098 = vrot.lane.b32.xlu0 %v927_v19, %s1782_s26  ;;  %1609 = vmatprep.mubr.msk.bf16.mxu1 %vm930_vm3, %v927_v19 }
 0x410   : > { %1610 = vmatmul.mubr.msk.bf16.vlgmr.msra.gmra.mrb[0].mxu1 %vm930_vm3, %v928_v18 }
 0x411   : > { %1620 = vmatpush3.bf16.xpose.msra.mxu1 %v1112_v20 }
 0x480   : > { %v1101_v22 = vpop.permute.xlu1 %1100 }
 0x481   : > { %v1099_v21 = vpop.permute.xlu0 %1098 }
 0x482   : > { %1621 = vmatprep.mubr.msk.bf16.mxu1 %vm930_vm3, %v1099_v21 }
 0x483   : > { %1622 = vmatmul.mubr.msk.bf16.vlgmr.msra.gmra.mrb[4].mxu1 %vm930_vm3, %v1101_v22 }
 0x4e3   : > { %v1611_v23 = vpop.f32.mrb[0].mxu1 }
 0x4e4   : > { %v974_v24 = vpop.f32.mrb[1].mxu1  ;;  %v995_v25 = vsel %vm930_vm3, %v1611_v23, -inf }
 0x4e5   : > { %996 = vmax.xlane.f32.xlu0 %v995_v25  ;;  %v1612_v26 = vpop.f32.mrb[2].mxu1  ;;  %v989_v27 = vsel %vm930_vm3, %v974_v24, -inf }
 0x4e6   : > { %990 = vmax.xlane.f32.xlu1 %v989_v27  ;;  %v977_v28 = vpop.f32.mrb[3].mxu1  ;;  %v998_v30 = vsel %vm930_vm3, %v1612_v26, -inf }
 0x4e7   : > { %v992_v29 = vsel %vm930_vm3, %v977_v28, -inf }
 0x4e9   : > { %993 = vmax.xlane.f32.xlu0 %v992_v29 }
 0x4ea   : > { %999 = vmax.xlane.f32.xlu1 %v998_v30 }
 0x556   : > { %v1623_v32 = vpop.f32.mrb[4].mxu1 }
 0x557   : > { %v1148_v33 = vpop.f32.mrb[5].mxu1  ;;  %v1169_v34 = vsel %vm930_vm3, %v1623_v32, -inf }
 0x558   : > { %v1624_v35 = vpop.f32.mrb[6].mxu1  ;;  %1170 = vmax.xlane.f32.xlu0 %v1169_v34  ;;  %v1163_v38 = vsel %vm930_vm3, %v1148_v33, -inf }
 0x559   : > { %v1151_v36 = vpop.f32.mrb[7].mxu1  ;;  %v1172_v39 = vsel %vm930_vm3, %v1624_v35, -inf }
 0x55a   : > { %v1166_v37 = vsel %vm930_vm3, %v1151_v36, -inf }
 0x55b   : > { %1167 = vmax.xlane.f32.xlu1 %v1166_v37 }
 0x55c   : > { %1164 = vmax.xlane.f32.xlu0 %v1163_v38 }
 0x55f   : > { %1173 = vmax.xlane.f32.xlu1 %v1172_v39 }
 0x572   : > { %v997_v40 = vpop.xlane.xlu0 %996  ;;  %1203 = vrot.lane.b32.xlu0 %v1201_v31, %s1782_s26 }
 0x573   : > { %v1003_v41 = vsub.f32 %v1611_v23, %v997_v40  ;;  %v991_v42 = vpop.xlane.xlu1 %990 }
 0x574   : > { %v1001_v43 = vsub.f32 %v974_v24, %v991_v42 }
 0x575   : > { %v1009_v44 = vmul.f32 1.442695, %v1003_v41 }
 0x576   : > { %v1005_v45 = vmul.f32 1.442695, %v1001_v43  ;;  %v994_v46 = vpop.xlane.xlu0 %993  ;;  %v1706_v43 = vld [vmem:[%s2075_s12] sm:$0xff]  }
 0x577   : > { %v1002_v47 = vsub.f32 %v977_v28, %v994_v46  ;;  %v1000_v48 = vpop.xlane.xlu1 %999  ;;  %1708 = vpow2.f32 %v1009_v44  ;;  %1631 = vmatprep.subr.bf16.mxu1 %v1706_v43  ;;  %v1707_v44 = vld [vmem:[%s2075_s12 + $0x8] sm:$0xff]  }
 0x578   : > { %v1004_v49 = vsub.f32 %v1612_v26, %v1000_v48  ;;  %1710 = vpow2.f32 %v1005_v45  ;;  %1632 = vmatpush3.bf16.msra.mxu1 %v1706_v43 }
 0x579   : > { %v1007_v50 = vmul.f32 1.442695, %v1002_v47  ;;  %1633 = vmatprep.subr.bf16.mxu1 %v1707_v44 }
 0x57a   : > { %v1011_v51 = vmul.f32 1.442695, %v1004_v49 }
 0x57b   : > { %1712 = vpow2.f32 %v1007_v50 }
 0x57c   : > { %1714 = vpow2.f32 %v1011_v51  ;;  %1634 = vmatpush3.bf16.msra.mxu1 %v1707_v44 }
 0x581   : > { %v1709_v52 = vpop.eup %1708 }
 0x582   : > { %v1711_v53 = vpop.eup %1710  ;;  %v1019_v58 = vsel %vm930_vm3, %v1709_v52, 0.0 }
 0x583   : > { %v1013_v18 = vsel %vm930_vm3, %v1711_v53, 0.0 }
 0x585   : > { %v1713_v54 = vpop.eup %1712 }
 0x586   : > { %v1715_v55 = vpop.eup %1714  ;;  %v1025_v56 = vpack.c.bf16 %v1713_v54, %v1711_v53  ;;  %v1016_v19 = vsel %vm930_vm3, %v1713_v54, 0.0 }
 0x587   : > { %v1026_v57 = vpack.c.bf16 %v1715_v55, %v1709_v52  ;;  %v1022_v20 = vsel %vm930_vm3, %v1715_v55, 0.0 }
 0x588   : > { %1615 = vmatprep.mubr.msk.bf16.mxu0 %vm930_vm3, %v1025_v56 }
 0x589   : > { %1616 = vmatmul.mubr.msk.bf16.vlgmr.msra.gmra.mrb[4].mxu0 %vm930_vm3, %v1026_v57 }
 0x591   : > { %1020 = vadd.xlane.f32.xlu0 %v1019_v58 }
 0x5e5   : > { %v1171_v59 = vpop.xlane.xlu0 %1170 }
 0x5e6   : > { %v1177_v60 = vsub.f32 %v1623_v32, %v1171_v59 }
 0x5e8   : > { %v1183_v61 = vmul.f32 1.442695, %v1177_v60  ;;  %v1168_v62 = vpop.xlane.xlu1 %1167 }
 0x5e9   : > { %v1176_v63 = vsub.f32 %v1151_v36, %v1168_v62  ;;  %v1165_v0 = vpop.xlane.xlu0 %1164 }
 0x5ea   : > { %1716 = vpow2.f32 %v1183_v61  ;;  %v1175_v1 = vsub.f32 %v1148_v33, %v1165_v0 }
 0x5eb   : > { %v1181_v2 = vmul.f32 1.442695, %v1176_v63  ;;  %v1520_v63 = vld [vmem:[%s2076_s13] ss:$0 sm:$0xff] }
 0x5ec   : > { %v1179_v3 = vmul.f32 1.442695, %v1175_v1  ;;  %v1174_v4 = vpop.xlane.xlu1 %1173 }
 0x5ed   : > { %1718 = vpow2.f32 %v1181_v2  ;;  %v1178_v5 = vsub.f32 %v1624_v35, %v1174_v4  ;;  %v1204_v6 = vpop.permute.xlu0 %1203 }
 0x5ee   : > { %1720 = vpow2.f32 %v1179_v3  ;;  %1625 = vmatprep.subr.bf16.mxu0 %v1204_v6 }
 0x5ef   : > { %v1185_v7 = vmul.f32 1.442695, %v1178_v5  ;;  %1626 = vmatpush3.bf16.msra.mxu0 %v1204_v6 }
 0x5f1   : > { %1722 = vpow2.f32 %v1185_v7 }
 0x5f4   : > { %v1717_v8 = vpop.eup %1716 }
 0x5f5   : > { %v1193_v9 = vsel %vm930_vm3, %v1717_v8, 0.0 }
 0x5f6   : > { %1194 = vadd.xlane.f32.xlu1 %v1193_v9 }
 0x5f7   : > { %v1719_v10 = vpop.eup %1718 }
 0x5f8   : > { %v1721_v11 = vpop.eup %1720  ;;  %v1190_v16 = vsel %vm930_vm3, %v1719_v10, 0.0 }
 0x5f9   : > { %v1187_v12 = vsel %vm930_vm3, %v1721_v11, 0.0  ;;  %v1199_v13 = vpack.c.bf16 %v1719_v10, %v1721_v11 }
 0x5fa   : > { %1188 = vadd.xlane.f32.xlu1 %v1187_v12 }
 0x5fb   : > { %v1723_v14 = vpop.eup %1722  ;;  %1627 = vmatprep.mubr.msk.bf16.mxu0 %vm930_vm3, %v1199_v13 }
 0x5fc   : > { %v1200_v15 = vpack.c.bf16 %v1723_v14, %v1717_v8  ;;  %v1196_v17 = vsel %vm930_vm3, %v1723_v14, 0.0 }
 0x5fe   : > { %1191 = vadd.xlane.f32.xlu1 %v1190_v16  ;;  %1628 = vmatmul.mubr.msk.bf16.vlgmr.msra.gmra.mrb[8].mxu0 %vm930_vm3, %v1200_v15 }
 0x602   : > { %1197 = vadd.xlane.f32.xlu1 %v1196_v17 }
 0x606   : > { %1014 = vadd.xlane.f32.xlu1 %v1013_v18 }
 0x60a   : > { %1017 = vadd.xlane.f32.xlu1 %v1016_v19 }
 0x60e   : > { %1023 = vadd.xlane.f32.xlu1 %v1022_v20 }
 0x61e   : > { %v1021_v31 = vpop.xlane.xlu0 %1020 }
 0x65c   : > { %v1617_v21 = vpop.f32.mrb[4].mxu0 }
 0x65d   : > { %v1068_v22 = vpop.f32.mrb[5].mxu0 }
 0x65e   : > { %v1618_v23 = vpop.f32.mrb[6].mxu0 }
 0x65f   : > { %v1071_v24 = vpop.f32.mrb[7].mxu0 }
 0x683   : > { %v1195_v25 = vpop.xlane.xlu1 %1194 }
 0x687   : > { %v1189_v26 = vpop.xlane.xlu1 %1188 }
 0x68b   : > { %v1192_v27 = vpop.xlane.xlu1 %1191 }
 0x68f   : > { %v1198_v28 = vpop.xlane.xlu1 %1197 }
 0x693   : > { %v1015_v29 = vpop.xlane.xlu1 %1014 }
 0x694   : > { %1724 = vrcp.f32 %v1015_v29 }
 0x697   : > { %v1018_v30 = vpop.xlane.xlu1 %1017 }
 0x698   : > { %1726 = vrcp.f32 %v1018_v30 }
 0x699   : > { %1728 = vrcp.f32 %v1021_v31 }
 0x69b   : > { %v1024_v32 = vpop.xlane.xlu1 %1023 }
 0x69c   : > { %1730 = vrcp.f32 %v1024_v32 }
 0x69d   : > { %1732 = vrcp.f32 %v1195_v25 }
 0x69e   : > { %v1725_v33 = vpop.eup %1724  ;;  %1734 = vrcp.f32 %v1189_v26 }
 0x69f   : > { %v1087_v35 = vmul.f32 %v1725_v33, %v1068_v22  ;;  %1736 = vrcp.f32 %v1198_v28 }
 0x6a0   : > { %1738 = vrcp.f32 %v1192_v27 }
 0x6a2   : > { %v1727_v34 = vpop.eup %1726 }
 0x6a3   : > { %v1088_v36 = vmul.f32 %v1727_v34, %v1071_v24  ;;  %v1729_v37 = vpop.eup %1728 }
 0x6a4   : > { %v1089_v40 = vmul.f32 %v1729_v37, %v1617_v21 }
 0x6a5   : > { %v1091_v38 = vpack.c.bf16 %v1088_v36, %v1087_v35 }
 0x6a6   : > { %v1731_v39 = vpop.eup %1730 }
 0x6a7   : > { %1093 = vst.msk [vmem:[#allocation4] sm:$0xff] %vm930_vm3, %v1091_v38  ;;  %v1090_v41 = vmul.f32 %v1731_v39, %v1618_v23  ;;  %v1733_v45 = vpop.eup %1732 }
 0x6a8   : > { %v1735_v47 = vpop.eup %1734 }
 0x6a9   : > { %v1092_v42 = vpack.c.bf16 %v1090_v41, %v1089_v40  ;;  %v1737_v50 = vpop.eup %1736 }
 0x6aa   : > { %v1739_v53 = vpop.eup %1738 }
 0x6ab   : > { %1094 = vst.msk [vmem:[#allocation4 + $0x8] sm:$0xff] %vm930_vm3, %v1092_v42 }
 0x6d1   : > { %v1629_v46 = vpop.f32.mrb[8].mxu0 }
 0x6d2   : > { %v1267_v48 = vmul.f32 %v1733_v45, %v1629_v46  ;;  %v1246_v49 = vpop.f32.mrb[9].mxu0 }
 0x6d3   : > { %v1265_v51 = vmul.f32 %v1735_v47, %v1246_v49  ;;  %v1630_v52 = vpop.f32.mrb[10].mxu0 }
 0x6d4   : > { %v1268_v54 = vmul.f32 %v1737_v50, %v1630_v52  ;;  %v1249_v55 = vpop.f32.mrb[11].mxu0 }
 0x6d5   : > { %v1266_v56 = vmul.f32 %v1739_v53, %v1249_v55 }
 0x6d6   : > { %v1270_v57 = vpack.c.bf16 %v1268_v54, %v1267_v48 }
 0x6d7   : > { %v1269_v58 = vpack.c.bf16 %v1266_v56, %v1265_v51 }
 0x6d9   : > { %1273 = vrot.lane.b32.xlu1 %v1269_v58, %s1783_s21 }
 0x6dd   : > { %1275 = vrot.lane.b32.xlu1 %v1270_v57, %s1783_s21 }
 0x74b   : > { %v1274_v59 = vpop.permute.xlu1 %1273 }
 0x74c   : > { %1280 = vst.msk [vmem:[#allocation4] sm:$0xff] %vm1279_vm4, %v1274_v59 }
 0x74f   : > { %v1276_v60 = vpop.permute.xlu1 %1275 }
 0x750   : > { %1281 = vst.msk [vmem:[#allocation4 + $0x8] sm:$0xff] %vm1279_vm4, %v1276_v60 }
 0x753   : > { %v1282_v61 = vld [vmem:[#allocation4] sm:$0xff] }
 0x754   : > { %1635 = vmatprep.mubr.msk.bf16.mxu1 %vm871_vm2, %v1282_v61 }
 0x757   : > { %v1283_v62 = vld [vmem:[#allocation4 + $0x8] sm:$0xff] }
 0x758   : > { %1636 = vmatmul.mubr.msk.bf16.vlgmr.msra.gmra.mrb[8].mxu1 %vm871_vm2, %v1283_v62 }
 0x82b   : > { %v1637_v0 = vpop.f32.mrb[8].mxu1 }
 0x82c   : > { %v1356_v1 = vadd.f32 %v1637_v0, %v1520_v63  ;;  %v1347_v2 = vpop.f32.mrb[9].mxu1 }
 0x82d   : > { %v1348_v3 = vadd.f32 %v1520_v63, %v1347_v2  ;;  %v1638_v4 = vpop.f32.mrb[10].mxu1 }
 0x82e   : > { %1364 = vst.msk [vmem:[%s1902_s17 + $0x10] sm:$0xff] %vm871_vm2, %v1356_v1  ;;  %v1359_v5 = vadd.f32 %v1638_v4, %v1520_v63  ;;  %v1350_v6 = vpop.f32.mrb[11].mxu1 }
 0x82f   : > { %1362 = vst.msk [vmem:[%s1902_s17] sm:$0xff] %vm871_vm2, %v1348_v3  ;;  %v1351_v7 = vadd.f32 %v1520_v63, %v1350_v6 }
 0x830   : > { %1365 = vst.msk [vmem:[%s1902_s17 + $0x18] sm:$0xff] %vm871_vm2, %v1359_v5 }
 0x831   : > { %1363 = vst.msk [vmem:[%s1902_s17 + $0x8] sm:$0xff] %vm871_vm2, %v1351_v7 }
 0x832 PF: > { %s2086_s15 = sld [smem:[#allocation7_spill]]  ;;  %s2087_s29 = sld [smem:[#allocation5_spill]] }
 0x833   : > { %s2088_s30 = sld [smem:[#allocation6_spill]]  ;;  %s2090_s16 = sld [smem:[#allocation9_spill]] }
 0x838   : > { %s24_s17 = sadd.s32 1, %s2086_s15   ;;  %s2089_s15 = sld [smem:[#allocation8_spill]] }
 0x839   : > { %p21_p8 = scmp.ge.s32.totalorder %s24_s17, 6  }
 0x83b   :  { %23 = sbr.rel (!%p21_p8) target bundleno = 3 (0x3), region = 113 }

// kernel: tpu_custom_call.1
= control target key start
LH: loop header
LB: loop body
LE: loop exit
PB: predicated region body
PF: predicated region fallthrough
CT: control target
= control target key end

     0   :  { %s1856_s29 = smov 0   ;;  %s1858_s30 = smov 0   ;;  %s2060_s0 = inlined_call_operand.vmem [shape: bf16[2,64,32], index: 0, kind: input, shape index: {}]   ;;  %s2061_s1 = inlined_call_operand.vmem [shape: bf16[2,16,128], index: 1, kind: input, shape index: {}]   ;;  %s2062_s2 = inlined_call_operand.vmem [shape: bf16[32,32], index: 2, kind: input, shape index: {}]   ;;  %s2063_s3 = inlined_call_operand.vmem [shape: f32[1,32], index: 3, kind: input, shape index: {}]   ;;  %s2064_s4 = inlined_call_operand.vmem [shape: bf16[32,32], index: 4, kind: input, shape index: {}]   ;;  %s2065_s5 = inlined_call_operand.vmem [shape: f32[1,32], index: 5, kind: input, shape index: {}]   ;;  %s2066_s6 = inlined_call_operand.vmem [shape: bf16[32,32], index: 6, kind: input, shape index: {}]   ;;  %s2067_s7 = inlined_call_operand.vmem [shape: f32[1,32], index: 7, kind: input, shape index: {}]   ;;  %s2068_s8 = inlined_call_operand.vmem [shape: bf16[128,32], index: 8, kind: input, shape index: {}]   ;;  %s2069_s9 = inlined_call_operand.vmem [shape: f32[1,32], index: 9, kind: input, shape index: {}]   ;;  %s2070_s10 = inlined_call_operand.vmem [shape: f32[1,32], index: 10, kind: input, shape index: {}]   ;;  %s2071_s11 = inlined_call_operand.vmem [shape: f32[1,32], index: 11, kind: input, shape index: {}]   ;;  %s2072_s12 = inlined_call_operand.vmem [shape: bf16[32,32], index: 12, kind: input, shape index: {}]   ;;  %s2073_s13 = inlined_call_operand.vmem [shape: f32[1,32], index: 13, kind: input, shape index: {}]   ;;  %s2074_s14 = inlined_call_operand.vmem [shape: f32[2,64,32], index: 14, kind: output, shape index: {}]  }
   0x1   :  { %s1860_s15 = smov 0   ;;  %s1862_s16 = smov 0  }
   0x2   :  { %s1864_s17 = smov 0  }
   0x3 LB: > { %2078 = sst [smem:[#allocation5_spill]] %s1767_s15  ;;  %s33_s18 = sadd.s32 1, %s1767_s15  ;;  %s1775_s17 = sphi %s1864_s17, %s24_s17   ;;  %s1771_s16 = sphi %s1862_s16, %s2087_s16   ;;  %s1767_s15 = sphi %s1860_s15, %s2086_s15   ;;  %s1763_s30 = sphi %s1858_s30, %s2085_s30   ;;  %s1759_s29 = sphi %s1856_s29, %s2084_s29  }
   0x4   : > { %2079 = sst [smem:[#allocation6_spill]] %s1771_s16  ;;  %s36_s19 = sadd.s32 1, %s1771_s16 }
   0x5   : > { %2080 = sst [smem:[#allocation7_spill]] %s1775_s17  ;;  %p34_p0 = scmp.ge.s32.totalorder %s33_s18, 2 }
   0x6   : > { %p1472_p1 = scmp.ge.s32.totalorder %s1775_s17, 1  ;;  %p443_p2 = scmp.lt.s32.totalorder %s1775_s17, 5 }
   0x7   : > { %s2089_s18 = smov (%p34_p0, %s33_s18), 0  ;;  %s2091_s19 = smov (!%p34_p0, %s36_s19), %s1771_s16 }
   0x8   : > { %2081 = sst [smem:[#allocation8_spill]] %s2089_s18  ;;  %p444_p3 = pnand %p1472_p1, %p443_p2 }
   0x9   : > { %p38_p4 = scmp.ge.s32.totalorder %s2091_s19, 2  ;;  %s1473_s20 = sshll.u32 (!%p444_p3), %s1759_s29, 2 }
   0xa   : > { %447 = sbr.rel (%p444_p3) target bundleno = 2098 (0x832), region = 76  ;;  %p503_p5 = scmp.lt.s32.totalorder (!%p444_p3), %s1763_s30, 1 }
   0xb   : > { %s2093_s19 = smov (%p38_p4, %s2091_s19), 0  ;;  %p505_p6 = scmp.lt.s32.totalorder (!%p444_p3), %s1473_s20, 7 }
   0xc   : > { %2082 = sst [smem:[#allocation9_spill]] %s2093_s19  ;;  %p1481_p7 = scmp.ne.s32.totalorder (!%p444_p3), %s1759_s29, 0 }
  0x11   : > { %s2095_s30 = smov (!%p503_p5, %s1763_s30), 1  ;;  %s2097_s20 = smov (!%p505_p6, %s1473_s20), 7 }
  0x12   : > { %s1474_s21 = sshll.u32 %s2095_s30, 3  ;;  %531 = sbr.rel (%p1481_p7) target bundleno = 811 (0x32b), region = 80  ;;  %v1682_v0 = vld [vmem:[%s2068_s8] sm:$0xff] (!%p1481_p7)   ;;  %v1777_v1 = vmov (!%p1481_p7), 0.0   ;;  %v1683_v2 = vld [vmem:[%s2068_s8 + $0x8] sm:$0xff] (!%p1481_p7)   ;;  %vm1778_vm0 = vmmov (!%p1481_p7), 0  }
  0x13   : > { %s508_s22 = sadd.s32 %s1474_s21, %s2097_s20  ;;  %s1889_s25 = scalar_lea.vmem %s2061_s1, %s1474_s21  ;;  %1560 = vmatprep.subr.bf16.mxu0 (!%p1481_p7), %v1777_v1  ;;  %1580 = vmatprep.subr.bf16.mxu1 (!%p1481_p7), %v1777_v1  ;;  %v1684_v3 = vld [vmem:[%s2068_s8 + $0x10] sm:$0xff] (!%p1481_p7)   ;;  %v1685_v4 = vld [vmem:[%s2068_s8 + $0x18] sm:$0xff] (!%p1481_p7)   ;;  %v1686_v5 = vld [vmem:[%s2068_s8 + $0x20] sm:$0xff] (!%p1481_p7)   ;;  %vm652_vm1 = vcmask (!%p1481_p7), 261120  }
  0x14   : > { %s1475_s26 = sshll.u32 %s508_s22, 2  ;;  %s1480_s27 = sshll.u32 %s508_s22, 3  ;;  %1561 = vmatpush3.bf16.msra.mxu0 (!%p1481_p7), %v1682_v0  ;;  %1576 = vmatprep.mubr.msk.bf16.mxu0 (!%p1481_p7), %vm1778_vm0, %v1777_v1  ;;  %v1687_v6 = vld [vmem:[%s2068_s8 + $0x28] sm:$0xff] (!%p1481_p7)   ;;  %v1688_v7 = vld [vmem:[%s2068_s8 + $0x30] sm:$0xff] (!%p1481_p7)   ;;  %v1689_v8 = vld [vmem:[%s2068_s8 + $0x38] sm:$0xff] (!%p1481_p7)  }
  0x15   : > { %s1894_s16 = scalar_lea.vmem %s2060_s0, %s1475_s26  ;;  %s1899_s17 = scalar_lea.vmem %s2074_s14, %s1480_s27  ;;  %1562 = vmatprep.subr.bf16.mxu0 (!%p1481_p7), %v1777_v1  ;;  %1584 = vmatprep.mubr.msk.bf16.mxu1 (!%p1481_p7), %vm1778_vm0, %v1777_v1  ;;  %v1690_v9 = vld [vmem:[%s1889_s25] sm:$0xff] (!%p1481_p7)   ;;  %v1692_v30 = vld [vmem:[%s2064_s4 + $0x8] sm:$0xff] (!%p1481_p7)  }
  0x16   : > { %v1482_v10 = vld [vmem:[%s2069_s9] ss:$0 sm:$0xff] (!%p1481_p7)  ;;  %v1694_v49 = vld [vmem:[%s2066_s6 + $0x8] sm:$0xff] (!%p1481_p7)  }
  0x17   : > { %v1691_v29 = vld [vmem:[%s2064_s4] sm:$0xff] (!%p1481_p7)  }
  0x18   : > { %1563 = vmatpush3.bf16.msra.mxu0 (!%p1481_p7), %v1683_v2  ;;  %1581 = vmatpush3.bf16.msra.mxu1 (!%p1481_p7), %v1691_v29  ;;  %v1492_v39 = vld [vmem:[%s2070_s10] ss:$0 sm:$0xff] (!%p1481_p7) }
  0x19   : > { %1564 = vmatprep.subr.bf16.mxu0 %v1777_v1  ;;  %1582 = vmatprep.subr.bf16.mxu1 %v1777_v1  ;;  %v1493_v43 = vld [vmem:[%s2071_s11] ss:$0 sm:$0xff] }
  0x1a   : > { %v1693_v47 = vld [vmem:[%s2066_s6] sm:$0xff]  }
  0x1b   : > { %v1494_v50 = vld [vmem:[%s2065_s5] ss:$0 sm:$0xff] }
  0x1c   : > { %1565 = vmatpush3.bf16.msra.mxu0 %v1684_v3  ;;  %1583 = vmatpush3.bf16.msra.mxu1 %v1692_v30  ;;  %v1498_v58 = vld [vmem:[%s2067_s7] ss:$0 sm:$0xff] }
  0x1d   : > { %1566 = vmatprep.subr.bf16.mxu0 %v1777_v1  ;;  %1588 = vmatprep.subr.bf16.mxu1 %v1777_v1 }
  0x20   : > { %1567 = vmatpush3.bf16.msra.mxu0 %v1685_v4 }
  0x21   : > { %1568 = vmatprep.subr.bf16.mxu0 %v1777_v1 }
  0x24   : > { %1569 = vmatpush3.bf16.msra.mxu0 %v1686_v5 }
  0x25   : > { %1570 = vmatprep.subr.bf16.mxu0 %v1777_v1 }
  0x28   : > { %1571 = vmatpush3.bf16.msra.mxu0 %v1687_v6 }
  0x29   : > { %1572 = vmatprep.subr.bf16.mxu0 %v1777_v1 }
  0x2c   : > { %1573 = vmatpush3.bf16.msra.mxu0 %v1688_v7 }
  0x2d   : > { %1574 = vmatprep.subr.bf16.mxu0 %v1777_v1 }
  0x30   : > { %1575 = vmatpush3.bf16.msra.mxu0 %v1689_v8 }
  0x33   : > { %1577 = vmatmul.mubr.bf16.vlgmr.msra.gmra.mrb[0].mxu0 %v1690_v9 }
 0x106   : > { %v645_v11 = vpop.f32.mrb[0].mxu0 }
 0x107   : > { %v646_v12 = vadd.f32 %v1482_v10, %v645_v11  ;;  %v1578_v13 = vpop.f32.mrb[1].mxu0 }
 0x108   : > { %v648_v14 = vpop.f32.mrb[2].mxu0 }
 0x109   : > { %v649_v15 = vadd.f32 %v1482_v10, %v648_v14  ;;  %v1579_v16 = vpop.f32.mrb[3].mxu0  ;;  %v653_v17 = vsel %vm652_vm1, %v646_v12, 0.0 }
 0x10a   : > { %654 = vadd.xlane.f32.xlu0 %v653_v17 }
 0x10b   : > { %v656_v18 = vsel %vm652_vm1, %v649_v15, 0.0 }
 0x10e   : > { %657 = vadd.xlane.f32.xlu0 %v656_v18 }
 0x197   : > { %v655_v19 = vpop.xlane.xlu0 %654 }
 0x198   : > { %v660_v20 = vmul.f32 0.03125, %v655_v19 }
 0x19a   : > { %v662_v21 = vsub.f32 %v646_v12, %v660_v20 }
 0x19b   : > { %v658_v22 = vpop.xlane.xlu0 %657 }
 0x19c   : > { %v661_v23 = vmul.f32 0.03125, %v658_v22  ;;  %v664_v24 = vmul.f32 %v662_v21, %v662_v21 }
 0x19e   : > { %v663_v25 = vsub.f32 %v649_v15, %v661_v23  ;;  %v666_v26 = vsel %vm652_vm1, %v664_v24, 0.0 }
 0x19f   : > { %667 = vadd.xlane.f32.xlu1 %v666_v26 }
 0x1a0   : > { %v665_v27 = vmul.f32 %v663_v25, %v663_v25 }
 0x1a2   : > { %v669_v28 = vsel %vm652_vm1, %v665_v27, 0.0 }
 0x1a3   : > { %670 = vadd.xlane.f32.xlu1 %v669_v28 }
 0x22c   : > { %v668_v31 = vpop.xlane.xlu1 %667 }
 0x22d   : > { %v672_v32 = vmul.f32 0.03125, %v668_v31 }
 0x22f   : > { %v674_v33 = vadd.f32 1e-05, %v672_v32 }
 0x230   : > { %v671_v34 = vpop.xlane.xlu1 %670 }
 0x231   : > { %1695 = vrsqrt.f32 %v674_v33  ;;  %v673_v35 = vmul.f32 0.03125, %v671_v34 }
 0x233   : > { %v675_v36 = vadd.f32 1e-05, %v673_v35 }
 0x235   : > { %1697 = vrsqrt.f32 %v675_v36 }
 0x23b   : > { %v1696_v37 = vpop.eup %1695 }
 0x23c   : > { %v678_v38 = vmul.f32 %v1696_v37, %v662_v21 }
 0x23e   : > { %v687_v42 = vmul.f32 %v1492_v39, %v678_v38 }
 0x23f   : > { %v1698_v40 = vpop.eup %1697 }
 0x240   : > { %v679_v41 = vmul.f32 %v1698_v40, %v663_v25  ;;  %v696_v45 = vadd.f32 %v1493_v43, %v687_v42 }
 0x242   : > { %v688_v44 = vmul.f32 %v1492_v39, %v679_v41 }
 0x244   : > { %v697_v46 = vadd.f32 %v1493_v43, %v688_v44 }
 0x246   : > { %v698_v48 = vpack.c.bf16 %v697_v46, %v696_v45 }
 0x248   : > { %1585 = vmatmul.mubr.msk.bf16.vlgmr.msra.gmra.mrb[0].mxu1 %vm652_vm1, %v698_v48 }
 0x249   : > { %1589 = vmatpush3.bf16.msra.mxu1 %v1693_v47  ;;  %1592 = vmatprep.mubr.msk.bf16.mxu1 %vm1778_vm0, %v1777_v1 }
 0x24a   : > { %1590 = vmatprep.subr.bf16.mxu1 %v1777_v1 }
 0x24d   : > { %1591 = vmatpush3.bf16.msra.mxu1 %v1694_v49 }
 0x250   : > { %1593 = vmatmul.mubr.msk.bf16.vlgmr.msra.gmra.mrb[4].mxu1 %vm652_vm1, %v698_v48 }
 0x31b   : > { %v759_v51 = vpop.f32.mrb[0].mxu1 }
 0x31c   : > { %v1586_v52 = vpop.f32.mrb[1].mxu1  ;;  %v760_v54 = vadd.f32 %v1494_v50, %v759_v51 }
 0x31d   : > { %v762_v53 = vpop.f32.mrb[2].mxu1 }
 0x31e   : > { %v763_v55 = vadd.f32 %v1494_v50, %v762_v53  ;;  %v1587_v56 = vpop.f32.mrb[3].mxu1 }
 0x320   : > { %v766_v57 = vpack.c.bf16 %v763_v55, %v760_v54 }
 0x322   : > { %767 = vst.msk [vmem:[#allocation2] sm:$0xff] %vm652_vm1, %v766_v57 }
 0x323   : > { %v825_v59 = vpop.f32.mrb[4].mxu1 }
 0x324   : > { %v1594_v60 = vpop.f32.mrb[5].mxu1  ;;  %v826_v62 = vadd.f32 %v1498_v58, %v825_v59 }
 0x325   : > { %v828_v61 = vpop.f32.mrb[6].mxu1 }
 0x326   : > { %v829_v63 = vadd.f32 %v1498_v58, %v828_v61  ;;  %v1595_v0 = vpop.f32.mrb[7].mxu1 }
 0x328   : > { %v832_v1 = vpack.c.bf16 %v829_v63, %v826_v62 }
 0x32a   : > { %833 = vst.msk [vmem:[#allocation3] sm:$0xff] %vm652_vm1, %v832_v1 }
 0x32b PF: > { %v1699_v2 = vld [vmem:[%s2062_s2] sm:$0xff]   ;;  %v1700_v3 = vld [vmem:[%s2062_s2 + $0x8] sm:$0xff]   ;;  %vm871_vm2 = vcmask 261120   ;;  %s1779_s26 = smov 112   ;;  %vm930_vm3 = vcmask 130048   ;;  %s1780_s21 = smov 16  }
 0x32c   : > { %1596 = vmatprep.subr.bf16.mxu0 %v1699_v2  ;;  %v1701_v4 = vld [vmem:[%s1894_s16] sm:$0xff]   ;;  %v1702_v6 = vld [vmem:[%s1894_s16 + $0x8] sm:$0xff]   ;;  %vm1279_vm4 = vcmask 261248  }
 0x32d   : > { %1597 = vmatpush3.bf16.msra.mxu0 %v1699_v2  ;;  %1600 = vmatprep.mubr.msk.bf16.mxu0 %vm871_vm2, %v1701_v4  ;;  %v1095_v5 = vld [vmem:[#allocation2] sm:$0xff] }
 0x32e   : > { %1598 = vmatprep.subr.bf16.mxu0 %v1700_v3  ;;  %1103 = vrot.lane.b32.xlu0 %v1095_v5, %s1779_s26  ;;  %v938_v7 = vsel %vm930_vm3, %v1095_v5, 0  ;;  %v1502_v10 = vld [vmem:[%s2063_s3] ss:$0 sm:$0xff] }
 0x32f   : > { %1636 = vmatprep.subr.msk.bf16.mxu1 %vm930_vm3, %v1095_v5 }
 0x330   : > { %1605 = vmatpush3.bf16.xpose.msra.mxu1 %v938_v7 }
 0x331   : > { %1599 = vmatpush3.bf16.msra.mxu0 %v1700_v3  ;;  %v1201_v31 = vld [vmem:[#allocation3] sm:$0xff] }
 0x332   : > { %1610 = vmatprep.subr.bf16.mxu0 %v1201_v31 }
 0x334   : > { %1601 = vmatmul.mubr.msk.bf16.vlgmr.msra.gmra.mrb[0].mxu0 %vm871_vm2, %v1702_v6 }
 0x335   : > { %1611 = vmatpush3.bf16.msra.mxu0 %v1201_v31 }
 0x3a0   : > { %v1104_v8 = vpop.permute.xlu0 %1103 }
 0x3a1   : > { %1637 = vmatprep.subr.msk.bf16.mxu1 %vm930_vm3, %v1104_v8  ;;  %v1112_v20 = vsel %vm930_vm3, %v1104_v8, 0 }
 0x407   : > { %v1602_v9 = vpop.f32.mrb[0].mxu0 }
 0x408   : > { %v912_v11 = vpop.f32.mrb[1].mxu0  ;;  %v921_v13 = vadd.f32 %v1602_v9, %v1502_v10 }
 0x409   : > { %v1603_v12 = vpop.f32.mrb[2].mxu0  ;;  %v913_v16 = vadd.f32 %v1502_v10, %v912_v11 }
 0x40a   : > { %v924_v14 = vadd.f32 %v1603_v12, %v1502_v10  ;;  %v915_v15 = vpop.f32.mrb[3].mxu0 }
 0x40b   : > { %v916_v17 = vadd.f32 %v1502_v10, %v915_v15 }
 0x40c   : > { %v928_v18 = vpack.c.bf16 %v924_v14, %v921_v13 }
 0x40d   : > { %v927_v19 = vpack.c.bf16 %v916_v17, %v913_v16 }
 0x40e   : > { %1100 = vrot.lane.b32.xlu1 %v928_v18, %s1779_s26 }
 0x40f   : > { %1098 = vrot.lane.b32.xlu0 %v927_v19, %s1779_s26  ;;  %1606 = vmatprep.mubr.msk.bf16.mxu1 %vm930_vm3, %v927_v19 }
 0x410   : > { %1607 = vmatmul.mubr.msk.bf16.vlgmr.msra.gmra.mrb[0].mxu1 %vm930_vm3, %v928_v18 }
 0x411   : > { %1617 = vmatpush3.bf16.xpose.msra.mxu1 %v1112_v20 }
 0x480   : > { %v1101_v22 = vpop.permute.xlu1 %1100 }
 0x481   : > { %v1099_v21 = vpop.permute.xlu0 %1098 }
 0x482   : > { %1618 = vmatprep.mubr.msk.bf16.mxu1 %vm930_vm3, %v1099_v21 }
 0x483   : > { %1619 = vmatmul.mubr.msk.bf16.vlgmr.msra.gmra.mrb[4].mxu1 %vm930_vm3, %v1101_v22 }
 0x4e3   : > { %v1608_v23 = vpop.f32.mrb[0].mxu1 }
 0x4e4   : > { %v974_v24 = vpop.f32.mrb[1].mxu1  ;;  %v995_v25 = vsel %vm930_vm3, %v1608_v23, -inf }
 0x4e5   : > { %996 = vmax.xlane.f32.xlu0 %v995_v25  ;;  %v1609_v26 = vpop.f32.mrb[2].mxu1  ;;  %v989_v27 = vsel %vm930_vm3, %v974_v24, -inf }
 0x4e6   : > { %990 = vmax.xlane.f32.xlu1 %v989_v27  ;;  %v977_v28 = vpop.f32.mrb[3].mxu1  ;;  %v998_v30 = vsel %vm930_vm3, %v1609_v26, -inf }
 0x4e7   : > { %v992_v29 = vsel %vm930_vm3, %v977_v28, -inf }
 0x4e9   : > { %993 = vmax.xlane.f32.xlu0 %v992_v29 }
 0x4ea   : > { %999 = vmax.xlane.f32.xlu1 %v998_v30 }
 0x556   : > { %v1620_v32 = vpop.f32.mrb[4].mxu1 }
 0x557   : > { %v1148_v33 = vpop.f32.mrb[5].mxu1  ;;  %v1169_v34 = vsel %vm930_vm3, %v1620_v32, -inf }
 0x558   : > { %v1621_v35 = vpop.f32.mrb[6].mxu1  ;;  %1170 = vmax.xlane.f32.xlu0 %v1169_v34  ;;  %v1163_v38 = vsel %vm930_vm3, %v1148_v33, -inf }
 0x559   : > { %v1151_v36 = vpop.f32.mrb[7].mxu1  ;;  %v1172_v39 = vsel %vm930_vm3, %v1621_v35, -inf }
 0x55a   : > { %v1166_v37 = vsel %vm930_vm3, %v1151_v36, -inf }
 0x55b   : > { %1167 = vmax.xlane.f32.xlu1 %v1166_v37 }
 0x55c   : > { %1164 = vmax.xlane.f32.xlu0 %v1163_v38 }
 0x55f   : > { %1173 = vmax.xlane.f32.xlu1 %v1172_v39 }
 0x572   : > { %v997_v40 = vpop.xlane.xlu0 %996  ;;  %1203 = vrot.lane.b32.xlu0 %v1201_v31, %s1779_s26 }
 0x573   : > { %v1003_v41 = vsub.f32 %v1608_v23, %v997_v40  ;;  %v991_v42 = vpop.xlane.xlu1 %990 }
 0x574   : > { %v1001_v43 = vsub.f32 %v974_v24, %v991_v42 }
 0x575   : > { %v1009_v44 = vmul.f32 1.442695, %v1003_v41 }
 0x576   : > { %v1005_v45 = vmul.f32 1.442695, %v1001_v43  ;;  %v994_v46 = vpop.xlane.xlu0 %993  ;;  %v1703_v43 = vld [vmem:[%s2072_s12] sm:$0xff]  }
 0x577   : > { %v1002_v47 = vsub.f32 %v977_v28, %v994_v46  ;;  %v1000_v48 = vpop.xlane.xlu1 %999  ;;  %1705 = vpow2.f32 %v1009_v44  ;;  %1628 = vmatprep.subr.bf16.mxu1 %v1703_v43  ;;  %v1704_v44 = vld [vmem:[%s2072_s12 + $0x8] sm:$0xff]  }
 0x578   : > { %v1004_v49 = vsub.f32 %v1609_v26, %v1000_v48  ;;  %1707 = vpow2.f32 %v1005_v45  ;;  %1629 = vmatpush3.bf16.msra.mxu1 %v1703_v43 }
 0x579   : > { %v1007_v50 = vmul.f32 1.442695, %v1002_v47  ;;  %1630 = vmatprep.subr.bf16.mxu1 %v1704_v44 }
 0x57a   : > { %v1011_v51 = vmul.f32 1.442695, %v1004_v49 }
 0x57b   : > { %1709 = vpow2.f32 %v1007_v50 }
 0x57c   : > { %1711 = vpow2.f32 %v1011_v51  ;;  %1631 = vmatpush3.bf16.msra.mxu1 %v1704_v44 }
 0x581   : > { %v1706_v52 = vpop.eup %1705 }
 0x582   : > { %v1708_v53 = vpop.eup %1707  ;;  %v1019_v58 = vsel %vm930_vm3, %v1706_v52, 0.0 }
 0x583   : > { %v1013_v18 = vsel %vm930_vm3, %v1708_v53, 0.0 }
 0x585   : > { %v1710_v54 = vpop.eup %1709 }
 0x586   : > { %v1712_v55 = vpop.eup %1711  ;;  %v1025_v56 = vpack.c.bf16 %v1710_v54, %v1708_v53  ;;  %v1016_v19 = vsel %vm930_vm3, %v1710_v54, 0.0 }
 0x587   : > { %v1026_v57 = vpack.c.bf16 %v1712_v55, %v1706_v52  ;;  %v1022_v20 = vsel %vm930_vm3, %v1712_v55, 0.0 }
 0x588   : > { %1612 = vmatprep.mubr.msk.bf16.mxu0 %vm930_vm3, %v1025_v56 }
 0x589   : > { %1613 = vmatmul.mubr.msk.bf16.vlgmr.msra.gmra.mrb[4].mxu0 %vm930_vm3, %v1026_v57 }
 0x591   : > { %1020 = vadd.xlane.f32.xlu0 %v1019_v58 }
 0x5e5   : > { %v1171_v59 = vpop.xlane.xlu0 %1170 }
 0x5e6   : > { %v1177_v60 = vsub.f32 %v1620_v32, %v1171_v59 }
 0x5e8   : > { %v1183_v61 = vmul.f32 1.442695, %v1177_v60  ;;  %v1168_v62 = vpop.xlane.xlu1 %1167 }
 0x5e9   : > { %v1176_v63 = vsub.f32 %v1151_v36, %v1168_v62  ;;  %v1165_v0 = vpop.xlane.xlu0 %1164 }
 0x5ea   : > { %1713 = vpow2.f32 %v1183_v61  ;;  %v1175_v1 = vsub.f32 %v1148_v33, %v1165_v0 }
 0x5eb   : > { %v1181_v2 = vmul.f32 1.442695, %v1176_v63  ;;  %v1517_v63 = vld [vmem:[%s2073_s13] ss:$0 sm:$0xff] }
 0x5ec   : > { %v1179_v3 = vmul.f32 1.442695, %v1175_v1  ;;  %v1174_v4 = vpop.xlane.xlu1 %1173 }
 0x5ed   : > { %1715 = vpow2.f32 %v1181_v2  ;;  %v1178_v5 = vsub.f32 %v1621_v35, %v1174_v4  ;;  %v1204_v6 = vpop.permute.xlu0 %1203 }
 0x5ee   : > { %1717 = vpow2.f32 %v1179_v3  ;;  %1622 = vmatprep.subr.bf16.mxu0 %v1204_v6 }
 0x5ef   : > { %v1185_v7 = vmul.f32 1.442695, %v1178_v5  ;;  %1623 = vmatpush3.bf16.msra.mxu0 %v1204_v6 }
 0x5f1   : > { %1719 = vpow2.f32 %v1185_v7 }
 0x5f4   : > { %v1714_v8 = vpop.eup %1713 }
 0x5f5   : > { %v1193_v9 = vsel %vm930_vm3, %v1714_v8, 0.0 }
 0x5f6   : > { %1194 = vadd.xlane.f32.xlu1 %v1193_v9 }
 0x5f7   : > { %v1716_v10 = vpop.eup %1715 }
 0x5f8   : > { %v1718_v11 = vpop.eup %1717  ;;  %v1190_v16 = vsel %vm930_vm3, %v1716_v10, 0.0 }
 0x5f9   : > { %v1187_v12 = vsel %vm930_vm3, %v1718_v11, 0.0  ;;  %v1199_v13 = vpack.c.bf16 %v1716_v10, %v1718_v11 }
 0x5fa   : > { %1188 = vadd.xlane.f32.xlu1 %v1187_v12 }
 0x5fb   : > { %v1720_v14 = vpop.eup %1719  ;;  %1624 = vmatprep.mubr.msk.bf16.mxu0 %vm930_vm3, %v1199_v13 }
 0x5fc   : > { %v1200_v15 = vpack.c.bf16 %v1720_v14, %v1714_v8  ;;  %v1196_v17 = vsel %vm930_vm3, %v1720_v14, 0.0 }
 0x5fe   : > { %1191 = vadd.xlane.f32.xlu1 %v1190_v16  ;;  %1625 = vmatmul.mubr.msk.bf16.vlgmr.msra.gmra.mrb[8].mxu0 %vm930_vm3, %v1200_v15 }
 0x602   : > { %1197 = vadd.xlane.f32.xlu1 %v1196_v17 }
 0x606   : > { %1014 = vadd.xlane.f32.xlu1 %v1013_v18 }
 0x60a   : > { %1017 = vadd.xlane.f32.xlu1 %v1016_v19 }
 0x60e   : > { %1023 = vadd.xlane.f32.xlu1 %v1022_v20 }
 0x61e   : > { %v1021_v31 = vpop.xlane.xlu0 %1020 }
 0x65c   : > { %v1614_v21 = vpop.f32.mrb[4].mxu0 }
 0x65d   : > { %v1068_v22 = vpop.f32.mrb[5].mxu0 }
 0x65e   : > { %v1615_v23 = vpop.f32.mrb[6].mxu0 }
 0x65f   : > { %v1071_v24 = vpop.f32.mrb[7].mxu0 }
 0x683   : > { %v1195_v25 = vpop.xlane.xlu1 %1194 }
 0x687   : > { %v1189_v26 = vpop.xlane.xlu1 %1188 }
 0x68b   : > { %v1192_v27 = vpop.xlane.xlu1 %1191 }
 0x68f   : > { %v1198_v28 = vpop.xlane.xlu1 %1197 }
 0x693   : > { %v1015_v29 = vpop.xlane.xlu1 %1014 }
 0x694   : > { %1721 = vrcp.f32 %v1015_v29 }
 0x697   : > { %v1018_v30 = vpop.xlane.xlu1 %1017 }
 0x698   : > { %1723 = vrcp.f32 %v1018_v30 }
 0x699   : > { %1725 = vrcp.f32 %v1021_v31 }
 0x69b   : > { %v1024_v32 = vpop.xlane.xlu1 %1023 }
 0x69c   : > { %1727 = vrcp.f32 %v1024_v32 }
 0x69d   : > { %1729 = vrcp.f32 %v1195_v25 }
 0x69e   : > { %v1722_v33 = vpop.eup %1721  ;;  %1731 = vrcp.f32 %v1189_v26 }
 0x69f   : > { %v1087_v35 = vmul.f32 %v1722_v33, %v1068_v22  ;;  %1733 = vrcp.f32 %v1198_v28 }
 0x6a0   : > { %1735 = vrcp.f32 %v1192_v27 }
 0x6a2   : > { %v1724_v34 = vpop.eup %1723 }
 0x6a3   : > { %v1088_v36 = vmul.f32 %v1724_v34, %v1071_v24  ;;  %v1726_v37 = vpop.eup %1725 }
 0x6a4   : > { %v1089_v40 = vmul.f32 %v1726_v37, %v1614_v21 }
 0x6a5   : > { %v1091_v38 = vpack.c.bf16 %v1088_v36, %v1087_v35 }
 0x6a6   : > { %v1728_v39 = vpop.eup %1727 }
 0x6a7   : > { %1093 = vst.msk [vmem:[#allocation4] sm:$0xff] %vm930_vm3, %v1091_v38  ;;  %v1090_v41 = vmul.f32 %v1728_v39, %v1615_v23  ;;  %v1730_v45 = vpop.eup %1729 }
 0x6a8   : > { %v1732_v47 = vpop.eup %1731 }
 0x6a9   : > { %v1092_v42 = vpack.c.bf16 %v1090_v41, %v1089_v40  ;;  %v1734_v50 = vpop.eup %1733 }
 0x6aa   : > { %v1736_v53 = vpop.eup %1735 }
 0x6ab   : > { %1094 = vst.msk [vmem:[#allocation4 + $0x8] sm:$0xff] %vm930_vm3, %v1092_v42 }
 0x6d1   : > { %v1626_v46 = vpop.f32.mrb[8].mxu0 }
 0x6d2   : > { %v1267_v48 = vmul.f32 %v1730_v45, %v1626_v46  ;;  %v1246_v49 = vpop.f32.mrb[9].mxu0 }
 0x6d3   : > { %v1265_v51 = vmul.f32 %v1732_v47, %v1246_v49  ;;  %v1627_v52 = vpop.f32.mrb[10].mxu0 }
 0x6d4   : > { %v1268_v54 = vmul.f32 %v1734_v50, %v1627_v52  ;;  %v1249_v55 = vpop.f32.mrb[11].mxu0 }
 0x6d5   : > { %v1266_v56 = vmul.f32 %v1736_v53, %v1249_v55 }
 0x6d6   : > { %v1270_v57 = vpack.c.bf16 %v1268_v54, %v1267_v48 }
 0x6d7   : > { %v1269_v58 = vpack.c.bf16 %v1266_v56, %v1265_v51 }
 0x6d9   : > { %1273 = vrot.lane.b32.xlu1 %v1269_v58, %s1780_s21 }
 0x6dd   : > { %1275 = vrot.lane.b32.xlu1 %v1270_v57, %s1780_s21 }
 0x74b   : > { %v1274_v59 = vpop.permute.xlu1 %1273 }
 0x74c   : > { %1280 = vst.msk [vmem:[#allocation4] sm:$0xff] %vm1279_vm4, %v1274_v59 }
 0x74f   : > { %v1276_v60 = vpop.permute.xlu1 %1275 }
 0x750   : > { %1281 = vst.msk [vmem:[#allocation4 + $0x8] sm:$0xff] %vm1279_vm4, %v1276_v60 }
 0x753   : > { %v1282_v61 = vld [vmem:[#allocation4] sm:$0xff] }
 0x754   : > { %1632 = vmatprep.mubr.msk.bf16.mxu1 %vm871_vm2, %v1282_v61 }
 0x757   : > { %v1283_v62 = vld [vmem:[#allocation4 + $0x8] sm:$0xff] }
 0x758   : > { %1633 = vmatmul.mubr.msk.bf16.vlgmr.msra.gmra.mrb[8].mxu1 %vm871_vm2, %v1283_v62 }
 0x82b   : > { %v1634_v0 = vpop.f32.mrb[8].mxu1 }
 0x82c   : > { %v1356_v1 = vadd.f32 %v1634_v0, %v1517_v63  ;;  %v1347_v2 = vpop.f32.mrb[9].mxu1 }
 0x82d   : > { %v1348_v3 = vadd.f32 %v1517_v63, %v1347_v2  ;;  %v1635_v4 = vpop.f32.mrb[10].mxu1 }
 0x82e   : > { %1364 = vst.msk [vmem:[%s1899_s17 + $0x10] sm:$0xff] %vm871_vm2, %v1356_v1  ;;  %v1359_v5 = vadd.f32 %v1635_v4, %v1517_v63  ;;  %v1350_v6 = vpop.f32.mrb[11].mxu1 }
 0x82f   : > { %1362 = vst.msk [vmem:[%s1899_s17] sm:$0xff] %vm871_vm2, %v1348_v3  ;;  %v1351_v7 = vadd.f32 %v1517_v63, %v1350_v6 }
 0x830   : > { %1365 = vst.msk [vmem:[%s1899_s17 + $0x18] sm:$0xff] %vm871_vm2, %v1359_v5 }
 0x831   : > { %1363 = vst.msk [vmem:[%s1899_s17 + $0x8] sm:$0xff] %vm871_vm2, %v1351_v7 }
 0x832 PF: > { %s2083_s15 = sld [smem:[#allocation7_spill]]  ;;  %s2084_s29 = sld [smem:[#allocation5_spill]] }
 0x833   : > { %s2085_s30 = sld [smem:[#allocation6_spill]]  ;;  %s2087_s16 = sld [smem:[#allocation9_spill]] }
 0x838   : > { %s24_s17 = sadd.s32 1, %s2083_s15   ;;  %s2086_s15 = sld [smem:[#allocation8_spill]] }
 0x839   : > { %p21_p8 = scmp.ge.s32.totalorder %s24_s17, 6  }
 0x83b   :  { %23 = sbr.rel (!%p21_p8) target bundleno = 3 (0x3), region = 113 }

</bundles_post_ra>
